<compile_context>
chip_gen: v7x
topology: tpu7x:2x2x1
jax: 0.10.0
libtpu: 0.0.40
codegen_flags: <defaults>
</compile_context>

<pallas_src>
import functools

import jax
import jax.numpy as jnp
from jax import lax
from jax.experimental import pallas as pl
from jax.experimental.pallas import tpu as pltpu

COMPUTE_DTYPE = jnp.bfloat16   # MXU input dtype; accumulation is always f32
LANE = 128
SUBLANE_PAD = 16               # keeps bf16 blocks sublane-tile aligned


def _round_up(x, m):
    return ((x + m - 1) // m) * m


# ------------------------------ Pallas kernel ---------------------------------

def gru_layer_kernel(x_ref, wih_ref, whh_ref, bgi_ref, bghn_ref, *refs,
                     seq_len, tc, emit_y, small_h):
    """One fused GRU-layer grid step.

    Grid = (N-blocks [parallel], time-chunks [arbitrary]).  The hidden state
    for this N-block lives in VMEM scratch and persists across time chunks.
    Per step:
      1. gi = x_chunk @ W_ih^T + b_gi for all `tc` timesteps at once (one big
         MXU matmul, independent of h, result kept in a VMEM scratch).
      2. Unrolled loop over timesteps: gh = h @ W_hh^T + b_ghn plus gate math.
    b_gi already folds b_ih (+ b_hh for the r/z gates); b_ghn holds b_hh for
    the n gate only (it must stay inside r*(...)).  Gate order (r, z, n)
    matches PyTorch; each gate occupies a lane-aligned [g*Hp, (g+1)*Hp) slab.
    """
    if emit_y:
        y_ref, hT_ref, gi_scratch, h_scratch = refs
    else:
        hT_ref, gi_scratch, h_scratch = refs
        y_ref = None

    c = pl.program_id(1)
    num_chunks = pl.num_programs(1)
    hp = h_scratch.shape[-1]
    tcb, tnb, ein = x_ref.shape

    @pl.when(c == 0)
    def _init():
        h_scratch[...] = jnp.zeros_like(h_scratch)

    # Hoisted input projection for the whole chunk (off the h->h dependency
    # chain, so the scheduler overlaps it with the serial gh matmuls below).
    # gi never touches HBM: it lives in VMEM scratch only.
    x2 = x_ref[...].reshape(tcb * tnb, ein)
    gi2 = (jnp.dot(x2, wih_ref[...], preferred_element_type=jnp.float32)
           + bgi_ref[...])
    gi_scratch[...] = gi2.reshape(tcb, tnb, 3 * hp)

    if small_h:
        # For small Hp the recurrence is VPU/EUP-bound: one tanh per gate
        # instead of exp + divide halves the EUP pressure of the sigmoids.
        def sigmoid(v):
            return 0.5 * (1.0 + jnp.tanh(0.5 * v))
    else:
        sigmoid = jax.nn.sigmoid

    def step(i, h):
        gi = gi_scratch[i]                                   # (tn, 3*Hp) f32
        gh = (jnp.dot(h.astype(whh_ref.dtype), whh_ref[...],
                      preferred_element_type=jnp.float32) + bghn_ref[...])
        r = sigmoid(gi[:, 0:hp] + gh[:, 0:hp])
        z = sigmoid(gi[:, hp:2 * hp] + gh[:, hp:2 * hp])
        n = jnp.tanh(gi[:, 2 * hp:3 * hp] + r * gh[:, 2 * hp:3 * hp])
        h_new = (1.0 - z) * n + z * h
        if seq_len % tc != 0:            # static: only mask when time is padded
            h_new = jnp.where(c * tc + i < seq_len, h_new, h)
        if emit_y:
            y_ref[i] = h_new.astype(y_ref.dtype)
        return h_new

    h = lax.fori_loop(0, tc, step, h_scratch[...], unroll=True)
    h_scratch[...] = h

    @pl.when(c == num_chunks - 1)        # single final-hidden store
    def _finalize():
        hT_ref[...] = h


# ------------------------------ Layer wrapper ---------------------------------

def gru_layer(x, layer, *, seq_len, tc, tn, emit_y, vmem_limit):
    """One fused GRU layer.

    x: (T_pad, N_pad, Ein_p) time-major, compute dtype.
    Returns (y, hT): y is (T_pad, N_pad, Hp) compute dtype (None if emit_y is
    False, i.e. the last layer, whose `output` is dead), hT is (N_pad, Hp) f32.
    """
    t_pad, n_pad, ein_p = x.shape
    w_ih_t = layer["w_ih_t"]      # (Ein_p, 3*Hp)  compute dtype
    w_hh_t = layer["w_hh_t"]      # (Hp,    3*Hp)  compute dtype
    b_gi = layer["b_gi"]          # (1, 3*Hp) f32: b_ih (+ b_hh for r/z gates)
    b_ghn = layer["b_ghn"]        # (1, 3*Hp) f32: b_hh for the n gate only
    hp = w_hh_t.shape[0]
    n_tc = t_pad // tc
    n_tn = n_pad // tn

    kernel = functools.partial(gru_layer_kernel, seq_len=seq_len, tc=tc,
                               emit_y=emit_y, small_h=(hp <= 256))

    out_shapes = []
    out_specs = []
    if emit_y:
        out_shapes.append(jax.ShapeDtypeStruct((t_pad, n_pad, hp), x.dtype))
        out_specs.append(pl.BlockSpec((tc, tn, hp), lambda nb, c: (c, nb, 0)))
    out_shapes.append(jax.ShapeDtypeStruct((n_pad, hp), jnp.float32))
    out_specs.append(pl.BlockSpec((tn, hp), lambda nb, c: (nb, 0)))  # resident

    itemsize = jnp.dtype(x.dtype).itemsize
    flops = 2 * t_pad * n_pad * 3 * hp * (ein_p + hp) + 10 * t_pad * n_pad * hp
    trans = 3 * t_pad * n_pad * hp
    bytes_acc = (t_pad * n_pad * ein_p * itemsize
                 + (t_pad * n_pad * hp * itemsize if emit_y else 0)
                 + n_pad * hp * 4
                 + (ein_p + hp) * 3 * hp * 2 + 2 * 3 * hp * 4)
    cost = pl.CostEstimate(flops=flops, transcendentals=trans,
                           bytes_accessed=bytes_acc)

    # Grid-invariant weights/biases are passed as unblocked whole-array VMEM
    # operands: a single resident copy (no pointless double-buffering).
    resident = pl.BlockSpec(memory_space=pltpu.MemorySpace.VMEM)

    outs = pl.pallas_call(
        kernel,
        out_shape=tuple(out_shapes),
        grid_spec=pltpu.PrefetchScalarGridSpec(
            num_scalar_prefetch=0,
            grid=(n_tn, n_tc),
            in_specs=[
                pl.BlockSpec((tc, tn, ein_p), lambda nb, c: (c, nb, 0)),
                resident,   # w_ih_t
                resident,   # w_hh_t
                resident,   # b_gi
                resident,   # b_ghn
            ],
            out_specs=out_specs,
            scratch_shapes=[pltpu.VMEM((tc, tn, 3 * hp), jnp.float32),
                            pltpu.VMEM((tn, hp), jnp.float32)],
        ),
        compiler_params=pltpu.CompilerParams(
            dimension_semantics=("parallel", "arbitrary"),
            vmem_limit_bytes=vmem_limit),
        cost_estimate=cost,
    )(x, w_ih_t, w_hh_t, b_gi, b_ghn)

    if emit_y:
        y, h_t = outs
        return y, h_t
    return None, outs[0]


# ------------------------------ Tiling heuristics ------------------------------

def _choose_tiles(seq_len, batch, ein_p, hp):
    """Generation-aware (tc, tn, n_pad, vmem_limit_bytes)."""
    kind = jax.devices()[0].device_kind.lower()
    is_v5e = ("v5 lite" in kind) or ("v5e" in kind)
    is_v7 = "v7" in kind

    # N-block width: v6e/v7x have 256-wide MXUs -> prefer 256-row blocks;
    # v5e's 128x128 MXUs are already full at 128.
    tn_max = 128 if is_v5e else 256
    if batch <= LANE:
        n_pad = _round_up(batch, SUBLANE_PAD)
        tn = min(n_pad, tn_max)
    else:
        n_pad = _round_up(batch, LANE)
        tn = 256 if (tn_max >= 256 and n_pad % 256 == 0) else LANE

    # v7x megacore: the 'parallel' nb axis is sharded across 2 TensorCores;
    # keep >= 2 N-blocks whenever the (padded) batch allows.
    if is_v7 and (n_pad // tn) < 2 and n_pad >= 16 and (n_pad // 2) % 8 == 0:
        tn = n_pad // 2

    # Time-chunk size: as large as the VMEM budget allows (per-grid-step
    # overhead ~0.35us), capped at 16 unrolled steps.  The f32 gi scratch is
    # the dominant per-step block; v7x only has 64 MiB of VMEM.
    vmem_cap = (56 << 20) if is_v7 else (100 << 20)

    def footprint(tc_):
        x_blk = 2 * tc_ * tn * ein_p * 2           # bf16 x, double-buffered
        y_blk = 2 * tc_ * tn * hp * 2              # bf16 y, double-buffered
        gi = tc_ * tn * 3 * hp * 4                 # f32 gi scratch
        hid = 2 * tn * hp * 4                      # h scratch + resident hT
        wts = (ein_p + hp) * 3 * hp * 2 + 2 * 3 * hp * 4
        return x_blk + y_blk + gi + hid + wts

    tc = min(max(seq_len, 1), 16)
    while tc > 1 and footprint(tc) > vmem_cap - (8 << 20):
        tc = max(1, tc // 2)

    vmem_limit = int(min(vmem_cap, max(32 << 20, int(1.25 * footprint(tc)))))
    return tc, tn, n_pad, vmem_limit


# ------------------------------ Params / model --------------------------------

def init_params(key, vocab_dim, embedding_dim, hidden_size, n_layers):
    """PyTorch-layout parameters (w_ih: (3H, E_in), w_hh: (3H, H), gate r,z,n)."""
    keys = jax.random.split(key, 1 + 4 * n_layers)
    params = {
        "embedding": 0.1 * jax.random.normal(
            keys[0], (vocab_dim, embedding_dim), jnp.float32),
        "gru": [],
    }
    bound = 1.0 / float(hidden_size) ** 0.5
    in_dim = embedding_dim
    for l in range(n_layers):
        k = keys[1 + 4 * l: 1 + 4 * (l + 1)]
        params["gru"].append({
            "w_ih": jax.random.uniform(k[0], (3 * hidden_size, in_dim),
                                       jnp.float32, -bound, bound),
            "w_hh": jax.random.uniform(k[1], (3 * hidden_size, hidden_size),
                                       jnp.float32, -bound, bound),
            "b_ih": jax.random.uniform(k[2], (3 * hidden_size,),
                                       jnp.float32, -bound, bound),
            "b_hh": jax.random.uniform(k[3], (3 * hidden_size,),
                                       jnp.float32, -bound, bound),
        })
        in_dim = hidden_size
    return params


def prepare_params(params, compute_dtype=COMPUTE_DTYPE):
    """One-time conversion to kernel layout: transpose, pad every gate to a
    128-lane boundary, fold the r/z half of b_hh into the input-projection
    bias (b_hh_n must stay inside r*(W_hh h + b_hh_n) -- load-bearing split),
    and cast matmul operands to the compute dtype."""
    vocab, emb_dim = params["embedding"].shape
    hidden = params["gru"][0]["w_hh"].shape[1]
    hp = _round_up(hidden, LANE)
    ep = _round_up(emb_dim, LANE)

    emb = jnp.zeros((vocab, ep), compute_dtype)
    emb = emb.at[:, :emb_dim].set(params["embedding"].astype(compute_dtype))
    prep = {"embedding": emb, "gru": []}

    in_dim, in_pad = emb_dim, ep
    for lp in params["gru"]:
        w_ih, w_hh = lp["w_ih"], lp["w_hh"]
        b_ih, b_hh = lp["b_ih"], lp["b_hh"]
        wih_t = jnp.zeros((in_pad, 3 * hp), jnp.float32)
        whh_t = jnp.zeros((hp, 3 * hp), jnp.float32)
        b_gi = jnp.zeros((1, 3 * hp), jnp.float32)
        b_ghn = jnp.zeros((1, 3 * hp), jnp.float32)
        for g in range(3):                       # gate order: r, z, n
            rows = slice(g * hidden, (g + 1) * hidden)
            cols = slice(g * hp, g * hp + hidden)
            wih_t = wih_t.at[:in_dim, cols].set(w_ih[rows, :].T)
            whh_t = whh_t.at[:hidden, cols].set(w_hh[rows, :].T)
            if g < 2:      # r, z: both biases can be pre-added into gi
                b_gi = b_gi.at[0, cols].set(b_ih[rows] + b_hh[rows])
            else:          # n: b_hh_n must stay inside r * (W_hh h + b_hh_n)
                b_gi = b_gi.at[0, cols].set(b_ih[rows])
                b_ghn = b_ghn.at[0, cols].set(b_hh[rows])
        prep["gru"].append({
            "w_ih_t": wih_t.astype(compute_dtype),
            "w_hh_t": whh_t.astype(compute_dtype),
            "b_gi": b_gi,
            "b_ghn": b_ghn,
        })
        in_dim, in_pad = hidden, hp
    return prep


def rnn_based_encoder_forward(prep, src, *, hidden_size):
    """src: (S, B) int32 tokens -> hidden: (n_layers, S, hidden_size)."""
    # token_embedding(src.permute(1,0)) -> (B, S, E); .permute(1,0,2) feeds
    # (S, B, E) to a batch_first GRU, so the GRU's batch is S and its time is
    # B.  Our kernels are time-major, i.e. exactly the (T=B, N=S, E) gather
    # below -- no extra transposes.
    # TODO(synk): the data-dependent embedding gather stays in XLA (jnp.take).
    emb = jnp.take(prep["embedding"], src.T, axis=0)       # (T, N, Ep)
    seq_len, batch, ep = emb.shape
    hp = prep["gru"][0]["w_hh_t"].shape[0]

    tc, tn, n_pad, vmem_limit = _choose_tiles(seq_len, batch, max(ep, hp), hp)
    t_pad = _round_up(seq_len, tc)

    x = jnp.zeros((t_pad, n_pad, ep), emb.dtype)
    x = x.at[:seq_len, :batch, :].set(emb)

    n_layers = len(prep["gru"])
    hiddens = []
    for li, layer in enumerate(prep["gru"]):
        emit_y = li < n_layers - 1      # the last layer's `output` is dead
        y, h_t = gru_layer(x, layer, seq_len=seq_len, tc=tc, tn=tn,
                           emit_y=emit_y, vmem_limit=vmem_limit)
        hiddens.append(h_t[:batch, :hidden_size])
        if emit_y:
            x = y
    return jnp.stack(hiddens, axis=0)    # (n_layers, S, H) == torch `hidden`


# ----------------------- Pure-JAX reference (lax.scan) ------------------------

def gru_layer_ref(x, w_ih, w_hh, b_ih, b_hh, compute_dtype):
    hidden = w_hh.shape[1]
    wih_t = w_ih.T.astype(compute_dtype)
    whh_t = w_hh.T.astype(compute_dtype)

    def step(h, xt):
        gi = jnp.dot(xt.astype(compute_dtype), wih_t,
                     preferred_element_type=jnp.float32) + b_ih
        gh = jnp.dot(h.astype(compute_dtype), whh_t,
                     preferred_element_type=jnp.float32) + b_hh
        r = jax.nn.sigmoid(gi[:, :hidden] + gh[:, :hidden])
        z = jax.nn.sigmoid(gi[:, hidden:2 * hidden] + gh[:, hidden:2 * hidden])
        n = jnp.tanh(gi[:, 2 * hidden:] + r * gh[:, 2 * hidden:])
        h_new = (1.0 - z) * n + z * h
        return h_new, h_new

    h0 = jnp.zeros((x.shape[1], hidden), jnp.float32)
    h_t, ys = lax.scan(step, h0, x)
    return ys, h_t


def rnn_based_encoder_ref(params, src, compute_dtype=COMPUTE_DTYPE):
    x = params["embedding"][src.T].astype(jnp.float32)     # (T=B, N=S, E)
    hiddens = []
    for layer in params["gru"]:
        x, h_t = gru_layer_ref(x, layer["w_ih"], layer["w_hh"],
                               layer["b_ih"], layer["b_hh"], compute_dtype)
        hiddens.append(h_t)
    return jnp.stack(hiddens, axis=0)


if __name__ == "__main__":
    vocab_dim, embedding_dim, hidden_size, n_layers = 32, 16, 32, 2
    S, B = 8, 4                                   # src: (seq, batch)

    key = jax.random.PRNGKey(0)
    pkey, skey = jax.random.split(key)
    params = init_params(pkey, vocab_dim, embedding_dim, hidden_size, n_layers)
    src = jax.random.randint(skey, (S, B), 0, vocab_dim, dtype=jnp.int32)

    prep = prepare_params(params)
    fwd = jax.jit(functools.partial(rnn_based_encoder_forward,
                                    hidden_size=hidden_size))
    out = jax.block_until_ready(fwd(prep, src))
    assert out.shape == (n_layers, S, hidden_size), out.shape

    # Reference uses the same bf16-input / f32-accumulate matmul precision.
    ref = jax.block_until_ready(rnn_based_encoder_ref(params, src))
    assert jnp.allclose(out, ref, atol=5e-3, rtol=5e-3), \
        float(jnp.max(jnp.abs(out - ref)))

    print("KERNEL_OK")
</pallas_src>

<mosaic_0001>
module attributes {stable_mosaic.version = 11 : i64} {
  func.func @gru_layer_kernel(%arg0: i32, %arg1: i32, %arg2: memref<4x16x128xbf16, #tpu.memory_space<vmem>>, %arg3: memref<128x384xbf16, #tpu.memory_space<vmem>>, %arg4: memref<128x384xbf16, #tpu.memory_space<vmem>>, %arg5: memref<1x384xf32, #tpu.memory_space<vmem>>, %arg6: memref<1x384xf32, #tpu.memory_space<vmem>>, %arg7: memref<16x128xf32, #tpu.memory_space<vmem>>, %arg8: memref<4x16x384xf32, #tpu.memory_space<vmem>>, %arg9: memref<16x128xf32, #tpu.memory_space<vmem>>) attributes {dimension_semantics = [#tpu.dimension_semantics<parallel>, #tpu.dimension_semantics<arbitrary>], iteration_bounds = array<i64: 1, 1>, scalar_prefetch = 0 : i64, scratch_operands = 2 : i64, tpu.core_type = #tpu.core_type<tc>, window_params = [{transform_indices = @transform_0, window_bounds = array<i64: 4, 16, 128>}, {pipeline_mode = #tpu.pipeline_mode<synchronous>, transform_indices = @transform_1, window_bounds = array<i64: 128, 384>}, {pipeline_mode = #tpu.pipeline_mode<synchronous>, transform_indices = @transform_2, window_bounds = array<i64: 128, 384>}, {pipeline_mode = #tpu.pipeline_mode<synchronous>, transform_indices = @transform_3, window_bounds = array<i64: 1, 384>}, {pipeline_mode = #tpu.pipeline_mode<synchronous>, transform_indices = @transform_4, window_bounds = array<i64: 1, 384>}, {transform_indices = @transform_5, window_bounds = array<i64: 16, 128>}]} {
    %c0_i32 = arith.constant 0 : i32
    %0 = arith.cmpi eq, %arg1, %c0_i32 : i32
    %1 = arith.extui %0 : i1 to i32
    %c0_i32_0 = arith.constant 0 : i32
    %2 = arith.cmpi ne, %1, %c0_i32_0 : i32
    scf.if %2 {
      %cst_73 = arith.constant 0.000000e+00 : f32
      %173 = vector.broadcast %cst_73 : f32 to vector<16x128xf32>
      %c0_74 = arith.constant 0 : index
      %c0_75 = arith.constant 0 : index
      %174 = vector.load %arg9[%c0_74, %c0_75] : memref<16x128xf32, #tpu.memory_space<vmem>>, vector<16x128xf32>
      tpu.vector_store %arg9[%c0_74, %c0_75], %173 {strides = array<i32>} : memref<16x128xf32, #tpu.memory_space<vmem>>, vector<16x128xf32>,
    } else {
    }
    %c0 = arith.constant 0 : index
    %c0_1 = arith.constant 0 : index
    %c0_2 = arith.constant 0 : index
    %3 = vector.load %arg2[%c0, %c0_1, %c0_2] : memref<4x16x128xbf16, #tpu.memory_space<vmem>>, vector<4x16x128xbf16>
    %4 = vector.shape_cast %3 : vector<4x16x128xbf16> to vector<64x128xbf16>
    %c0_3 = arith.constant 0 : index
    %c0_4 = arith.constant 0 : index
    %5 = vector.load %arg3[%c0_3, %c0_4] : memref<128x384xbf16, #tpu.memory_space<vmem>>, vector<128x384xbf16>
    %cst = arith.constant dense<0.000000e+00> : vector<64x384xf32>
    %6 = tpu.matmul %4, %5, %cst {dimension_numbers = #tpu.dot_dimension_numbers<[1], [0], [0], [1], [0, 0, 1, 1], [], []>} : vector<64x128xbf16>, vector<128x384xbf16>, vector<64x384xf32> -> vector<64x384xf32>
    %c0_5 = arith.constant 0 : index
    %c0_6 = arith.constant 0 : index
    %7 = vector.load %arg5[%c0_5, %c0_6] : memref<1x384xf32, #tpu.memory_space<vmem>>, vector<1x384xf32>
    %8 = vector.broadcast %7 : vector<1x384xf32> to vector<64x384xf32>
    %9 = arith.addf %6, %8 : vector<64x384xf32>
    %10 = vector.shape_cast %9 : vector<64x384xf32> to vector<4x16x384xf32>
    %c0_7 = arith.constant 0 : index
    %c0_8 = arith.constant 0 : index
    %c0_9 = arith.constant 0 : index
    %11 = vector.load %arg8[%c0_7, %c0_8, %c0_9] : memref<4x16x384xf32, #tpu.memory_space<vmem>>, vector<4x16x384xf32>
    tpu.vector_store %arg8[%c0_7, %c0_8, %c0_9], %10 {strides = array<i32>} : memref<4x16x384xf32, #tpu.memory_space<vmem>>, vector<4x16x384xf32>,
    %c0_10 = arith.constant 0 : index
    %c0_11 = arith.constant 0 : index
    %12 = vector.load %arg9[%c0_10, %c0_11] : memref<16x128xf32, #tpu.memory_space<vmem>>, vector<16x128xf32>
    %c0_i32_12 = arith.constant 0 : i32
    %13 = arith.index_cast %c0_i32_12 : i32 to index
    %c0_13 = arith.constant 0 : index
    %c0_14 = arith.constant 0 : index
    %14 = vector.load %arg8[%13, %c0_13, %c0_14] : memref<4x16x384xf32, #tpu.memory_space<vmem>>, vector<1x16x384xf32>
    %15 = vector.shape_cast %14 : vector<1x16x384xf32> to vector<16x384xf32>
    %16 = arith.truncf %12 : vector<16x128xf32> to vector<16x128xbf16>
    %c0_15 = arith.constant 0 : index
    %c0_16 = arith.constant 0 : index
    %17 = vector.load %arg4[%c0_15, %c0_16] : memref<128x384xbf16, #tpu.memory_space<vmem>>, vector<128x384xbf16>
    %cst_17 = arith.constant dense<0.000000e+00> : vector<16x384xf32>
    %18 = tpu.matmul %16, %17, %cst_17 {dimension_numbers = #tpu.dot_dimension_numbers<[1], [0], [0], [1], [0, 0, 1, 1], [], []>} : vector<16x128xbf16>, vector<128x384xbf16>, vector<16x384xf32> -> vector<16x384xf32>
    %c0_18 = arith.constant 0 : index
    %c0_19 = arith.constant 0 : index
    %19 = vector.load %arg6[%c0_18, %c0_19] : memref<1x384xf32, #tpu.memory_space<vmem>>, vector<1x384xf32>
    %20 = vector.broadcast %19 : vector<1x384xf32> to vector<16x384xf32>
    %21 = arith.addf %18, %20 : vector<16x384xf32>
    %22 = vector.extract_strided_slice %15 {offsets = [0, 0], sizes = [16, 128], strides = [1, 1]} : vector<16x384xf32> to vector<16x128xf32>
    %23 = vector.extract_strided_slice %21 {offsets = [0, 0], sizes = [16, 128], strides = [1, 1]} : vector<16x384xf32> to vector<16x128xf32>
    %24 = arith.addf %22, %23 : vector<16x128xf32>
    %cst_20 = arith.constant 5.000000e-01 : f32
    %25 = vector.broadcast %cst_20 : f32 to vector<16x128xf32>
    %26 = arith.mulf %25, %24 : vector<16x128xf32>
    %27 = math.tanh %26 : vector<16x128xf32>
    %cst_21 = arith.constant 1.000000e+00 : f32
    %28 = vector.broadcast %cst_21 : f32 to vector<16x128xf32>
    %29 = arith.addf %28, %27 : vector<16x128xf32>
    %cst_22 = arith.constant 5.000000e-01 : f32
    %30 = vector.broadcast %cst_22 : f32 to vector<16x128xf32>
    %31 = arith.mulf %30, %29 : vector<16x128xf32>
    %32 = vector.extract_strided_slice %15 {offsets = [0, 128], sizes = [16, 128], strides = [1, 1]} : vector<16x384xf32> to vector<16x128xf32>
    %33 = vector.extract_strided_slice %21 {offsets = [0, 128], sizes = [16, 128], strides = [1, 1]} : vector<16x384xf32> to vector<16x128xf32>
    %34 = arith.addf %32, %33 : vector<16x128xf32>
    %cst_23 = arith.constant 5.000000e-01 : f32
    %35 = vector.broadcast %cst_23 : f32 to vector<16x128xf32>
    %36 = arith.mulf %35, %34 : vector<16x128xf32>
    %37 = math.tanh %36 : vector<16x128xf32>
    %cst_24 = arith.constant 1.000000e+00 : f32
    %38 = vector.broadcast %cst_24 : f32 to vector<16x128xf32>
    %39 = arith.addf %38, %37 : vector<16x128xf32>
    %cst_25 = arith.constant 5.000000e-01 : f32
    %40 = vector.broadcast %cst_25 : f32 to vector<16x128xf32>
    %41 = arith.mulf %40, %39 : vector<16x128xf32>
    %42 = vector.extract_strided_slice %15 {offsets = [0, 256], sizes = [16, 128], strides = [1, 1]} : vector<16x384xf32> to vector<16x128xf32>
    %43 = vector.extract_strided_slice %21 {offsets = [0, 256], sizes = [16, 128], strides = [1, 1]} : vector<16x384xf32> to vector<16x128xf32>
    %44 = arith.mulf %31, %43 : vector<16x128xf32>
    %45 = arith.addf %42, %44 : vector<16x128xf32>
    %46 = math.tanh %45 : vector<16x128xf32>
    %cst_26 = arith.constant 1.000000e+00 : f32
    %47 = vector.broadcast %cst_26 : f32 to vector<16x128xf32>
    %48 = arith.subf %47, %41 : vector<16x128xf32>
    %49 = arith.mulf %48, %46 : vector<16x128xf32>
    %50 = arith.mulf %41, %12 : vector<16x128xf32>
    %51 = arith.addf %49, %50 : vector<16x128xf32>
    %c1_i32 = arith.constant 1 : i32
    %52 = arith.index_cast %c1_i32 : i32 to index
    %c0_27 = arith.constant 0 : index
    %c0_28 = arith.constant 0 : index
    %53 = vector.load %arg8[%52, %c0_27, %c0_28] : memref<4x16x384xf32, #tpu.memory_space<vmem>>, vector<1x16x384xf32>
    %54 = vector.shape_cast %53 : vector<1x16x384xf32> to vector<16x384xf32>
    %55 = arith.truncf %51 : vector<16x128xf32> to vector<16x128xbf16>
    %c0_29 = arith.constant 0 : index
    %c0_30 = arith.constant 0 : index
    %56 = vector.load %arg4[%c0_29, %c0_30] : memref<128x384xbf16, #tpu.memory_space<vmem>>, vector<128x384xbf16>
    %cst_31 = arith.constant dense<0.000000e+00> : vector<16x384xf32>
    %57 = tpu.matmul %55, %56, %cst_31 {dimension_numbers = #tpu.dot_dimension_numbers<[1], [0], [0], [1], [0, 0, 1, 1], [], []>} : vector<16x128xbf16>, vector<128x384xbf16>, vector<16x384xf32> -> vector<16x384xf32>
    %c0_32 = arith.constant 0 : index
    %c0_33 = arith.constant 0 : index
    %58 = vector.load %arg6[%c0_32, %c0_33] : memref<1x384xf32, #tpu.memory_space<vmem>>, vector<1x384xf32>
    %59 = vector.broadcast %58 : vector<1x384xf32> to vector<16x384xf32>
    %60 = arith.addf %57, %59 : vector<16x384xf32>
    %61 = vector.extract_strided_slice %54 {offsets = [0, 0], sizes = [16, 128], strides = [1, 1]} : vector<16x384xf32> to vector<16x128xf32>
    %62 = vector.extract_strided_slice %60 {offsets = [0, 0], sizes = [16, 128], strides = [1, 1]} : vector<16x384xf32> to vector<16x128xf32>
    %63 = arith.addf %61, %62 : vector<16x128xf32>
    %cst_34 = arith.constant 5.000000e-01 : f32
    %64 = vector.broadcast %cst_34 : f32 to vector<16x128xf32>
    %65 = arith.mulf %64, %63 : vector<16x128xf32>
    %66 = math.tanh %65 : vector<16x128xf32>
    %cst_35 = arith.constant 1.000000e+00 : f32
    %67 = vector.broadcast %cst_35 : f32 to vector<16x128xf32>
    %68 = arith.addf %67, %66 : vector<16x128xf32>
    %cst_36 = arith.constant 5.000000e-01 : f32
    %69 = vector.broadcast %cst_36 : f32 to vector<16x128xf32>
    %70 = arith.mulf %69, %68 : vector<16x128xf32>
    %71 = vector.extract_strided_slice %54 {offsets = [0, 128], sizes = [16, 128], strides = [1, 1]} : vector<16x384xf32> to vector<16x128xf32>
    %72 = vector.extract_strided_slice %60 {offsets = [0, 128], sizes = [16, 128], strides = [1, 1]} : vector<16x384xf32> to vector<16x128xf32>
    %73 = arith.addf %71, %72 : vector<16x128xf32>
    %cst_37 = arith.constant 5.000000e-01 : f32
    %74 = vector.broadcast %cst_37 : f32 to vector<16x128xf32>
    %75 = arith.mulf %74, %73 : vector<16x128xf32>
    %76 = math.tanh %75 : vector<16x128xf32>
    %cst_38 = arith.constant 1.000000e+00 : f32
    %77 = vector.broadcast %cst_38 : f32 to vector<16x128xf32>
    %78 = arith.addf %77, %76 : vector<16x128xf32>
    %cst_39 = arith.constant 5.000000e-01 : f32
    %79 = vector.broadcast %cst_39 : f32 to vector<16x128xf32>
    %80 = arith.mulf %79, %78 : vector<16x128xf32>
    %81 = vector.extract_strided_slice %54 {offsets = [0, 256], sizes = [16, 128], strides = [1, 1]} : vector<16x384xf32> to vector<16x128xf32>
    %82 = vector.extract_strided_slice %60 {offsets = [0, 256], sizes = [16, 128], strides = [1, 1]} : vector<16x384xf32> to vector<16x128xf32>
    %83 = arith.mulf %70, %82 : vector<16x128xf32>
    %84 = arith.addf %81, %83 : vector<16x128xf32>
    %85 = math.tanh %84 : vector<16x128xf32>
    %cst_40 = arith.constant 1.000000e+00 : f32
    %86 = vector.broadcast %cst_40 : f32 to vector<16x128xf32>
    %87 = arith.subf %86, %80 : vector<16x128xf32>
    %88 = arith.mulf %87, %85 : vector<16x128xf32>
    %89 = arith.mulf %80, %51 : vector<16x128xf32>
    %90 = arith.addf %88, %89 : vector<16x128xf32>
    %c2_i32 = arith.constant 2 : i32
    %91 = arith.index_cast %c2_i32 : i32 to index
    %c0_41 = arith.constant 0 : index
    %c0_42 = arith.constant 0 : index
    %92 = vector.load %arg8[%91, %c0_41, %c0_42] : memref<4x16x384xf32, #tpu.memory_space<vmem>>, vector<1x16x384xf32>
    %93 = vector.shape_cast %92 : vector<1x16x384xf32> to vector<16x384xf32>
    %94 = arith.truncf %90 : vector<16x128xf32> to vector<16x128xbf16>
    %c0_43 = arith.constant 0 : index
    %c0_44 = arith.constant 0 : index
    %95 = vector.load %arg4[%c0_43, %c0_44] : memref<128x384xbf16, #tpu.memory_space<vmem>>, vector<128x384xbf16>
    %cst_45 = arith.constant dense<0.000000e+00> : vector<16x384xf32>
    %96 = tpu.matmul %94, %95, %cst_45 {dimension_numbers = #tpu.dot_dimension_numbers<[1], [0], [0], [1], [0, 0, 1, 1], [], []>} : vector<16x128xbf16>, vector<128x384xbf16>, vector<16x384xf32> -> vector<16x384xf32>
    %c0_46 = arith.constant 0 : index
    %c0_47 = arith.constant 0 : index
    %97 = vector.load %arg6[%c0_46, %c0_47] : memref<1x384xf32, #tpu.memory_space<vmem>>, vector<1x384xf32>
    %98 = vector.broadcast %97 : vector<1x384xf32> to vector<16x384xf32>
    %99 = arith.addf %96, %98 : vector<16x384xf32>
    %100 = vector.extract_strided_slice %93 {offsets = [0, 0], sizes = [16, 128], strides = [1, 1]} : vector<16x384xf32> to vector<16x128xf32>
    %101 = vector.extract_strided_slice %99 {offsets = [0, 0], sizes = [16, 128], strides = [1, 1]} : vector<16x384xf32> to vector<16x128xf32>
    %102 = arith.addf %100, %101 : vector<16x128xf32>
    %cst_48 = arith.constant 5.000000e-01 : f32
    %103 = vector.broadcast %cst_48 : f32 to vector<16x128xf32>
    %104 = arith.mulf %103, %102 : vector<16x128xf32>
    %105 = math.tanh %104 : vector<16x128xf32>
    %cst_49 = arith.constant 1.000000e+00 : f32
    %106 = vector.broadcast %cst_49 : f32 to vector<16x128xf32>
    %107 = arith.addf %106, %105 : vector<16x128xf32>
    %cst_50 = arith.constant 5.000000e-01 : f32
    %108 = vector.broadcast %cst_50 : f32 to vector<16x128xf32>
    %109 = arith.mulf %108, %107 : vector<16x128xf32>
    %110 = vector.extract_strided_slice %93 {offsets = [0, 128], sizes = [16, 128], strides = [1, 1]} : vector<16x384xf32> to vector<16x128xf32>
    %111 = vector.extract_strided_slice %99 {offsets = [0, 128], sizes = [16, 128], strides = [1, 1]} : vector<16x384xf32> to vector<16x128xf32>
    %112 = arith.addf %110, %111 : vector<16x128xf32>
    %cst_51 = arith.constant 5.000000e-01 : f32
    %113 = vector.broadcast %cst_51 : f32 to vector<16x128xf32>
    %114 = arith.mulf %113, %112 : vector<16x128xf32>
    %115 = math.tanh %114 : vector<16x128xf32>
    %cst_52 = arith.constant 1.000000e+00 : f32
    %116 = vector.broadcast %cst_52 : f32 to vector<16x128xf32>
    %117 = arith.addf %116, %115 : vector<16x128xf32>
    %cst_53 = arith.constant 5.000000e-01 : f32
    %118 = vector.broadcast %cst_53 : f32 to vector<16x128xf32>
    %119 = arith.mulf %118, %117 : vector<16x128xf32>
    %120 = vector.extract_strided_slice %93 {offsets = [0, 256], sizes = [16, 128], strides = [1, 1]} : vector<16x384xf32> to vector<16x128xf32>
    %121 = vector.extract_strided_slice %99 {offsets = [0, 256], sizes = [16, 128], strides = [1, 1]} : vector<16x384xf32> to vector<16x128xf32>
    %122 = arith.mulf %109, %121 : vector<16x128xf32>
    %123 = arith.addf %120, %122 : vector<16x128xf32>
    %124 = math.tanh %123 : vector<16x128xf32>
    %cst_54 = arith.constant 1.000000e+00 : f32
    %125 = vector.broadcast %cst_54 : f32 to vector<16x128xf32>
    %126 = arith.subf %125, %119 : vector<16x128xf32>
    %127 = arith.mulf %126, %124 : vector<16x128xf32>
    %128 = arith.mulf %119, %90 : vector<16x128xf32>
    %129 = arith.addf %127, %128 : vector<16x128xf32>
    %c3_i32 = arith.constant 3 : i32
    %130 = arith.index_cast %c3_i32 : i32 to index
    %c0_55 = arith.constant 0 : index
    %c0_56 = arith.constant 0 : index
    %131 = vector.load %arg8[%130, %c0_55, %c0_56] : memref<4x16x384xf32, #tpu.memory_space<vmem>>, vector<1x16x384xf32>
    %132 = vector.shape_cast %131 : vector<1x16x384xf32> to vector<16x384xf32>
    %133 = arith.truncf %129 : vector<16x128xf32> to vector<16x128xbf16>
    %c0_57 = arith.constant 0 : index
    %c0_58 = arith.constant 0 : index
    %134 = vector.load %arg4[%c0_57, %c0_58] : memref<128x384xbf16, #tpu.memory_space<vmem>>, vector<128x384xbf16>
    %cst_59 = arith.constant dense<0.000000e+00> : vector<16x384xf32>
    %135 = tpu.matmul %133, %134, %cst_59 {dimension_numbers = #tpu.dot_dimension_numbers<[1], [0], [0], [1], [0, 0, 1, 1], [], []>} : vector<16x128xbf16>, vector<128x384xbf16>, vector<16x384xf32> -> vector<16x384xf32>
    %c0_60 = arith.constant 0 : index
    %c0_61 = arith.constant 0 : index
    %136 = vector.load %arg6[%c0_60, %c0_61] : memref<1x384xf32, #tpu.memory_space<vmem>>, vector<1x384xf32>
    %137 = vector.broadcast %136 : vector<1x384xf32> to vector<16x384xf32>
    %138 = arith.addf %135, %137 : vector<16x384xf32>
    %139 = vector.extract_strided_slice %132 {offsets = [0, 0], sizes = [16, 128], strides = [1, 1]} : vector<16x384xf32> to vector<16x128xf32>
    %140 = vector.extract_strided_slice %138 {offsets = [0, 0], sizes = [16, 128], strides = [1, 1]} : vector<16x384xf32> to vector<16x128xf32>
    %141 = arith.addf %139, %140 : vector<16x128xf32>
    %cst_62 = arith.constant 5.000000e-01 : f32
    %142 = vector.broadcast %cst_62 : f32 to vector<16x128xf32>
    %143 = arith.mulf %142, %141 : vector<16x128xf32>
    %144 = math.tanh %143 : vector<16x128xf32>
    %cst_63 = arith.constant 1.000000e+00 : f32
    %145 = vector.broadcast %cst_63 : f32 to vector<16x128xf32>
    %146 = arith.addf %145, %144 : vector<16x128xf32>
    %cst_64 = arith.constant 5.000000e-01 : f32
    %147 = vector.broadcast %cst_64 : f32 to vector<16x128xf32>
    %148 = arith.mulf %147, %146 : vector<16x128xf32>
    %149 = vector.extract_strided_slice %132 {offsets = [0, 128], sizes = [16, 128], strides = [1, 1]} : vector<16x384xf32> to vector<16x128xf32>
    %150 = vector.extract_strided_slice %138 {offsets = [0, 128], sizes = [16, 128], strides = [1, 1]} : vector<16x384xf32> to vector<16x128xf32>
    %151 = arith.addf %149, %150 : vector<16x128xf32>
    %cst_65 = arith.constant 5.000000e-01 : f32
    %152 = vector.broadcast %cst_65 : f32 to vector<16x128xf32>
    %153 = arith.mulf %152, %151 : vector<16x128xf32>
    %154 = math.tanh %153 : vector<16x128xf32>
    %cst_66 = arith.constant 1.000000e+00 : f32
    %155 = vector.broadcast %cst_66 : f32 to vector<16x128xf32>
    %156 = arith.addf %155, %154 : vector<16x128xf32>
    %cst_67 = arith.constant 5.000000e-01 : f32
    %157 = vector.broadcast %cst_67 : f32 to vector<16x128xf32>
    %158 = arith.mulf %157, %156 : vector<16x128xf32>
    %159 = vector.extract_strided_slice %132 {offsets = [0, 256], sizes = [16, 128], strides = [1, 1]} : vector<16x384xf32> to vector<16x128xf32>
    %160 = vector.extract_strided_slice %138 {offsets = [0, 256], sizes = [16, 128], strides = [1, 1]} : vector<16x384xf32> to vector<16x128xf32>
    %161 = arith.mulf %148, %160 : vector<16x128xf32>
    %162 = arith.addf %159, %161 : vector<16x128xf32>
    %163 = math.tanh %162 : vector<16x128xf32>
    %cst_68 = arith.constant 1.000000e+00 : f32
    %164 = vector.broadcast %cst_68 : f32 to vector<16x128xf32>
    %165 = arith.subf %164, %158 : vector<16x128xf32>
    %166 = arith.mulf %165, %163 : vector<16x128xf32>
    %167 = arith.mulf %158, %129 : vector<16x128xf32>
    %168 = arith.addf %166, %167 : vector<16x128xf32>
    %c4_i32 = arith.constant 4 : i32
    %c0_69 = arith.constant 0 : index
    %c0_70 = arith.constant 0 : index
    %169 = vector.load %arg9[%c0_69, %c0_70] : memref<16x128xf32, #tpu.memory_space<vmem>>, vector<16x128xf32>
    tpu.vector_store %arg9[%c0_69, %c0_70], %168 {strides = array<i32>} : memref<16x128xf32, #tpu.memory_space<vmem>>, vector<16x128xf32>,
    %c0_i32_71 = arith.constant 0 : i32
    %170 = arith.cmpi eq, %arg1, %c0_i32_71 : i32
    %171 = arith.extui %170 : i1 to i32
    %c0_i32_72 = arith.constant 0 : i32
    %172 = arith.cmpi ne, %171, %c0_i32_72 : i32
    scf.if %172 {
      %c0_73 = arith.constant 0 : index
      %c0_74 = arith.constant 0 : index
      %173 = vector.load %arg7[%c0_73, %c0_74] : memref<16x128xf32, #tpu.memory_space<vmem>>, vector<16x128xf32>
      tpu.vector_store %arg7[%c0_73, %c0_74], %168 {strides = array<i32>} : memref<16x128xf32, #tpu.memory_space<vmem>>, vector<16x128xf32>,
    } else {
    }
    return
  }
  func.func @transform_0(%arg0: i32, %arg1: i32) -> (i32, i32, i32) {
    %c0_i32 = arith.constant 0 : i32
    %c0_i32_0 = arith.constant 0 : i32
    return %arg1, %arg0, %c0_i32 : i32, i32, i32
  }
  func.func @transform_1(%arg0: i32, %arg1: i32) -> (i32, i32) {
    %c0_i32 = arith.constant 0 : i32
    %c0_i32_0 = arith.constant 0 : i32
    %c0_i32_1 = arith.constant 0 : i32
    return %c0_i32, %c0_i32_0 : i32, i32
  }
  func.func @transform_2(%arg0: i32, %arg1: i32) -> (i32, i32) {
    %c0_i32 = arith.constant 0 : i32
    %c0_i32_0 = arith.constant 0 : i32
    %c0_i32_1 = arith.constant 0 : i32
    return %c0_i32, %c0_i32_0 : i32, i32
  }
  func.func @transform_3(%arg0: i32, %arg1: i32) -> (i32, i32) {
    %c0_i32 = arith.constant 0 : i32
    %c0_i32_0 = arith.constant 0 : i32
    %c0_i32_1 = arith.constant 0 : i32
    return %c0_i32, %c0_i32_0 : i32, i32
  }
  func.func @transform_4(%arg0: i32, %arg1: i32) -> (i32, i32) {
    %c0_i32 = arith.constant 0 : i32
    %c0_i32_0 = arith.constant 0 : i32
    %c0_i32_1 = arith.constant 0 : i32
    return %c0_i32, %c0_i32_0 : i32, i32
  }
  func.func @transform_5(%arg0: i32, %arg1: i32) -> (i32, i32) {
    %c0_i32 = arith.constant 0 : i32
    %c0_i32_0 = arith.constant 0 : i32
    return %arg0, %c0_i32 : i32, i32
  }
}

module attributes {stable_mosaic.version = 11 : i64} {
  func.func @gru_layer_kernel(%arg0: i32, %arg1: i32, %arg2: memref<4x16x128xbf16, #tpu.memory_space<vmem>>, %arg3: memref<128x384xbf16, #tpu.memory_space<vmem>>, %arg4: memref<128x384xbf16, #tpu.memory_space<vmem>>, %arg5: memref<1x384xf32, #tpu.memory_space<vmem>>, %arg6: memref<1x384xf32, #tpu.memory_space<vmem>>, %arg7: memref<4x16x128xbf16, #tpu.memory_space<vmem>>, %arg8: memref<16x128xf32, #tpu.memory_space<vmem>>, %arg9: memref<4x16x384xf32, #tpu.memory_space<vmem>>, %arg10: memref<16x128xf32, #tpu.memory_space<vmem>>) attributes {dimension_semantics = [#tpu.dimension_semantics<parallel>, #tpu.dimension_semantics<arbitrary>], iteration_bounds = array<i64: 1, 1>, scalar_prefetch = 0 : i64, scratch_operands = 2 : i64, tpu.core_type = #tpu.core_type<tc>, window_params = [{transform_indices = @transform_0, window_bounds = array<i64: 4, 16, 128>}, {pipeline_mode = #tpu.pipeline_mode<synchronous>, transform_indices = @transform_1, window_bounds = array<i64: 128, 384>}, {pipeline_mode = #tpu.pipeline_mode<synchronous>, transform_indices = @transform_2, window_bounds = array<i64: 128, 384>}, {pipeline_mode = #tpu.pipeline_mode<synchronous>, transform_indices = @transform_3, window_bounds = array<i64: 1, 384>}, {pipeline_mode = #tpu.pipeline_mode<synchronous>, transform_indices = @transform_4, window_bounds = array<i64: 1, 384>}, {transform_indices = @transform_5, window_bounds = array<i64: 4, 16, 128>}, {transform_indices = @transform_6, window_bounds = array<i64: 16, 128>}]} {
    %c0_i32 = arith.constant 0 : i32
    %0 = arith.cmpi eq, %arg1, %c0_i32 : i32
    %1 = arith.extui %0 : i1 to i32
    %c0_i32_0 = arith.constant 0 : i32
    %2 = arith.cmpi ne, %1, %c0_i32_0 : i32
    scf.if %2 {
      %cst_81 = arith.constant 0.000000e+00 : f32
      %193 = vector.broadcast %cst_81 : f32 to vector<16x128xf32>
      %c0_82 = arith.constant 0 : index
      %c0_83 = arith.constant 0 : index
      %194 = vector.load %arg10[%c0_82, %c0_83] : memref<16x128xf32, #tpu.memory_space<vmem>>, vector<16x128xf32>
      tpu.vector_store %arg10[%c0_82, %c0_83], %193 {strides = array<i32>} : memref<16x128xf32, #tpu.memory_space<vmem>>, vector<16x128xf32>,
    } else {
    }
    %c0 = arith.constant 0 : index
    %c0_1 = arith.constant 0 : index
    %c0_2 = arith.constant 0 : index
    %3 = vector.load %arg2[%c0, %c0_1, %c0_2] : memref<4x16x128xbf16, #tpu.memory_space<vmem>>, vector<4x16x128xbf16>
    %4 = vector.shape_cast %3 : vector<4x16x128xbf16> to vector<64x128xbf16>
    %c0_3 = arith.constant 0 : index
    %c0_4 = arith.constant 0 : index
    %5 = vector.load %arg3[%c0_3, %c0_4] : memref<128x384xbf16, #tpu.memory_space<vmem>>, vector<128x384xbf16>
    %cst = arith.constant dense<0.000000e+00> : vector<64x384xf32>
    %6 = tpu.matmul %4, %5, %cst {dimension_numbers = #tpu.dot_dimension_numbers<[1], [0], [0], [1], [0, 0, 1, 1], [], []>} : vector<64x128xbf16>, vector<128x384xbf16>, vector<64x384xf32> -> vector<64x384xf32>
    %c0_5 = arith.constant 0 : index
    %c0_6 = arith.constant 0 : index
    %7 = vector.load %arg5[%c0_5, %c0_6] : memref<1x384xf32, #tpu.memory_space<vmem>>, vector<1x384xf32>
    %8 = vector.broadcast %7 : vector<1x384xf32> to vector<64x384xf32>
    %9 = arith.addf %6, %8 : vector<64x384xf32>
    %10 = vector.shape_cast %9 : vector<64x384xf32> to vector<4x16x384xf32>
    %c0_7 = arith.constant 0 : index
    %c0_8 = arith.constant 0 : index
    %c0_9 = arith.constant 0 : index
    %11 = vector.load %arg9[%c0_7, %c0_8, %c0_9] : memref<4x16x384xf32, #tpu.memory_space<vmem>>, vector<4x16x384xf32>
    tpu.vector_store %arg9[%c0_7, %c0_8, %c0_9], %10 {strides = array<i32>} : memref<4x16x384xf32, #tpu.memory_space<vmem>>, vector<4x16x384xf32>,
    %c0_10 = arith.constant 0 : index
    %c0_11 = arith.constant 0 : index
    %12 = vector.load %arg10[%c0_10, %c0_11] : memref<16x128xf32, #tpu.memory_space<vmem>>, vector<16x128xf32>
    %c0_i32_12 = arith.constant 0 : i32
    %13 = arith.index_cast %c0_i32_12 : i32 to index
    %c0_13 = arith.constant 0 : index
    %c0_14 = arith.constant 0 : index
    %14 = vector.load %arg9[%13, %c0_13, %c0_14] : memref<4x16x384xf32, #tpu.memory_space<vmem>>, vector<1x16x384xf32>
    %15 = vector.shape_cast %14 : vector<1x16x384xf32> to vector<16x384xf32>
    %16 = arith.truncf %12 : vector<16x128xf32> to vector<16x128xbf16>
    %c0_15 = arith.constant 0 : index
    %c0_16 = arith.constant 0 : index
    %17 = vector.load %arg4[%c0_15, %c0_16] : memref<128x384xbf16, #tpu.memory_space<vmem>>, vector<128x384xbf16>
    %cst_17 = arith.constant dense<0.000000e+00> : vector<16x384xf32>
    %18 = tpu.matmul %16, %17, %cst_17 {dimension_numbers = #tpu.dot_dimension_numbers<[1], [0], [0], [1], [0, 0, 1, 1], [], []>} : vector<16x128xbf16>, vector<128x384xbf16>, vector<16x384xf32> -> vector<16x384xf32>
    %c0_18 = arith.constant 0 : index
    %c0_19 = arith.constant 0 : index
    %19 = vector.load %arg6[%c0_18, %c0_19] : memref<1x384xf32, #tpu.memory_space<vmem>>, vector<1x384xf32>
    %20 = vector.broadcast %19 : vector<1x384xf32> to vector<16x384xf32>
    %21 = arith.addf %18, %20 : vector<16x384xf32>
    %22 = vector.extract_strided_slice %15 {offsets = [0, 0], sizes = [16, 128], strides = [1, 1]} : vector<16x384xf32> to vector<16x128xf32>
    %23 = vector.extract_strided_slice %21 {offsets = [0, 0], sizes = [16, 128], strides = [1, 1]} : vector<16x384xf32> to vector<16x128xf32>
    %24 = arith.addf %22, %23 : vector<16x128xf32>
    %cst_20 = arith.constant 5.000000e-01 : f32
    %25 = vector.broadcast %cst_20 : f32 to vector<16x128xf32>
    %26 = arith.mulf %25, %24 : vector<16x128xf32>
    %27 = math.tanh %26 : vector<16x128xf32>
    %cst_21 = arith.constant 1.000000e+00 : f32
    %28 = vector.broadcast %cst_21 : f32 to vector<16x128xf32>
    %29 = arith.addf %28, %27 : vector<16x128xf32>
    %cst_22 = arith.constant 5.000000e-01 : f32
    %30 = vector.broadcast %cst_22 : f32 to vector<16x128xf32>
    %31 = arith.mulf %30, %29 : vector<16x128xf32>
    %32 = vector.extract_strided_slice %15 {offsets = [0, 128], sizes = [16, 128], strides = [1, 1]} : vector<16x384xf32> to vector<16x128xf32>
    %33 = vector.extract_strided_slice %21 {offsets = [0, 128], sizes = [16, 128], strides = [1, 1]} : vector<16x384xf32> to vector<16x128xf32>
    %34 = arith.addf %32, %33 : vector<16x128xf32>
    %cst_23 = arith.constant 5.000000e-01 : f32
    %35 = vector.broadcast %cst_23 : f32 to vector<16x128xf32>
    %36 = arith.mulf %35, %34 : vector<16x128xf32>
    %37 = math.tanh %36 : vector<16x128xf32>
    %cst_24 = arith.constant 1.000000e+00 : f32
    %38 = vector.broadcast %cst_24 : f32 to vector<16x128xf32>
    %39 = arith.addf %38, %37 : vector<16x128xf32>
    %cst_25 = arith.constant 5.000000e-01 : f32
    %40 = vector.broadcast %cst_25 : f32 to vector<16x128xf32>
    %41 = arith.mulf %40, %39 : vector<16x128xf32>
    %42 = vector.extract_strided_slice %15 {offsets = [0, 256], sizes = [16, 128], strides = [1, 1]} : vector<16x384xf32> to vector<16x128xf32>
    %43 = vector.extract_strided_slice %21 {offsets = [0, 256], sizes = [16, 128], strides = [1, 1]} : vector<16x384xf32> to vector<16x128xf32>
    %44 = arith.mulf %31, %43 : vector<16x128xf32>
    %45 = arith.addf %42, %44 : vector<16x128xf32>
    %46 = math.tanh %45 : vector<16x128xf32>
    %cst_26 = arith.constant 1.000000e+00 : f32
    %47 = vector.broadcast %cst_26 : f32 to vector<16x128xf32>
    %48 = arith.subf %47, %41 : vector<16x128xf32>
    %49 = arith.mulf %48, %46 : vector<16x128xf32>
    %50 = arith.mulf %41, %12 : vector<16x128xf32>
    %51 = arith.addf %49, %50 : vector<16x128xf32>
    %52 = arith.truncf %51 : vector<16x128xf32> to vector<16x128xbf16>
    %53 = arith.index_cast %c0_i32_12 : i32 to index
    %c0_27 = arith.constant 0 : index
    %c0_28 = arith.constant 0 : index
    %54 = vector.load %arg7[%53, %c0_27, %c0_28] : memref<4x16x128xbf16, #tpu.memory_space<vmem>>, vector<1x16x128xbf16>
    %55 = vector.shape_cast %54 : vector<1x16x128xbf16> to vector<16x128xbf16>
    %56 = vector.shape_cast %52 : vector<16x128xbf16> to vector<1x16x128xbf16>
    tpu.vector_store %arg7[%53, %c0_27, %c0_28], %56 {strides = array<i32>} : memref<4x16x128xbf16, #tpu.memory_space<vmem>>, vector<1x16x128xbf16>,
    %c1_i32 = arith.constant 1 : i32
    %57 = arith.index_cast %c1_i32 : i32 to index
    %c0_29 = arith.constant 0 : index
    %c0_30 = arith.constant 0 : index
    %58 = vector.load %arg9[%57, %c0_29, %c0_30] : memref<4x16x384xf32, #tpu.memory_space<vmem>>, vector<1x16x384xf32>
    %59 = vector.shape_cast %58 : vector<1x16x384xf32> to vector<16x384xf32>
    %60 = arith.truncf %51 : vector<16x128xf32> to vector<16x128xbf16>
    %c0_31 = arith.constant 0 : index
    %c0_32 = arith.constant 0 : index
    %61 = vector.load %arg4[%c0_31, %c0_32] : memref<128x384xbf16, #tpu.memory_space<vmem>>, vector<128x384xbf16>
    %cst_33 = arith.constant dense<0.000000e+00> : vector<16x384xf32>
    %62 = tpu.matmul %60, %61, %cst_33 {dimension_numbers = #tpu.dot_dimension_numbers<[1], [0], [0], [1], [0, 0, 1, 1], [], []>} : vector<16x128xbf16>, vector<128x384xbf16>, vector<16x384xf32> -> vector<16x384xf32>
    %c0_34 = arith.constant 0 : index
    %c0_35 = arith.constant 0 : index
    %63 = vector.load %arg6[%c0_34, %c0_35] : memref<1x384xf32, #tpu.memory_space<vmem>>, vector<1x384xf32>
    %64 = vector.broadcast %63 : vector<1x384xf32> to vector<16x384xf32>
    %65 = arith.addf %62, %64 : vector<16x384xf32>
    %66 = vector.extract_strided_slice %59 {offsets = [0, 0], sizes = [16, 128], strides = [1, 1]} : vector<16x384xf32> to vector<16x128xf32>
    %67 = vector.extract_strided_slice %65 {offsets = [0, 0], sizes = [16, 128], strides = [1, 1]} : vector<16x384xf32> to vector<16x128xf32>
    %68 = arith.addf %66, %67 : vector<16x128xf32>
    %cst_36 = arith.constant 5.000000e-01 : f32
    %69 = vector.broadcast %cst_36 : f32 to vector<16x128xf32>
    %70 = arith.mulf %69, %68 : vector<16x128xf32>
    %71 = math.tanh %70 : vector<16x128xf32>
    %cst_37 = arith.constant 1.000000e+00 : f32
    %72 = vector.broadcast %cst_37 : f32 to vector<16x128xf32>
    %73 = arith.addf %72, %71 : vector<16x128xf32>
    %cst_38 = arith.constant 5.000000e-01 : f32
    %74 = vector.broadcast %cst_38 : f32 to vector<16x128xf32>
    %75 = arith.mulf %74, %73 : vector<16x128xf32>
    %76 = vector.extract_strided_slice %59 {offsets = [0, 128], sizes = [16, 128], strides = [1, 1]} : vector<16x384xf32> to vector<16x128xf32>
    %77 = vector.extract_strided_slice %65 {offsets = [0, 128], sizes = [16, 128], strides = [1, 1]} : vector<16x384xf32> to vector<16x128xf32>
    %78 = arith.addf %76, %77 : vector<16x128xf32>
    %cst_39 = arith.constant 5.000000e-01 : f32
    %79 = vector.broadcast %cst_39 : f32 to vector<16x128xf32>
    %80 = arith.mulf %79, %78 : vector<16x128xf32>
    %81 = math.tanh %80 : vector<16x128xf32>
    %cst_40 = arith.constant 1.000000e+00 : f32
    %82 = vector.broadcast %cst_40 : f32 to vector<16x128xf32>
    %83 = arith.addf %82, %81 : vector<16x128xf32>
    %cst_41 = arith.constant 5.000000e-01 : f32
    %84 = vector.broadcast %cst_41 : f32 to vector<16x128xf32>
    %85 = arith.mulf %84, %83 : vector<16x128xf32>
    %86 = vector.extract_strided_slice %59 {offsets = [0, 256], sizes = [16, 128], strides = [1, 1]} : vector<16x384xf32> to vector<16x128xf32>
    %87 = vector.extract_strided_slice %65 {offsets = [0, 256], sizes = [16, 128], strides = [1, 1]} : vector<16x384xf32> to vector<16x128xf32>
    %88 = arith.mulf %75, %87 : vector<16x128xf32>
    %89 = arith.addf %86, %88 : vector<16x128xf32>
    %90 = math.tanh %89 : vector<16x128xf32>
    %cst_42 = arith.constant 1.000000e+00 : f32
    %91 = vector.broadcast %cst_42 : f32 to vector<16x128xf32>
    %92 = arith.subf %91, %85 : vector<16x128xf32>
    %93 = arith.mulf %92, %90 : vector<16x128xf32>
    %94 = arith.mulf %85, %51 : vector<16x128xf32>
    %95 = arith.addf %93, %94 : vector<16x128xf32>
    %96 = arith.truncf %95 : vector<16x128xf32> to vector<16x128xbf16>
    %97 = arith.index_cast %c1_i32 : i32 to index
    %c0_43 = arith.constant 0 : index
    %c0_44 = arith.constant 0 : index
    %98 = vector.load %arg7[%97, %c0_43, %c0_44] : memref<4x16x128xbf16, #tpu.memory_space<vmem>>, vector<1x16x128xbf16>
    %99 = vector.shape_cast %98 : vector<1x16x128xbf16> to vector<16x128xbf16>
    %100 = vector.shape_cast %96 : vector<16x128xbf16> to vector<1x16x128xbf16>
    tpu.vector_store %arg7[%97, %c0_43, %c0_44], %100 {strides = array<i32>} : memref<4x16x128xbf16, #tpu.memory_space<vmem>>, vector<1x16x128xbf16>,
    %c2_i32 = arith.constant 2 : i32
    %101 = arith.index_cast %c2_i32 : i32 to index
    %c0_45 = arith.constant 0 : index
    %c0_46 = arith.constant 0 : index
    %102 = vector.load %arg9[%101, %c0_45, %c0_46] : memref<4x16x384xf32, #tpu.memory_space<vmem>>, vector<1x16x384xf32>
    %103 = vector.shape_cast %102 : vector<1x16x384xf32> to vector<16x384xf32>
    %104 = arith.truncf %95 : vector<16x128xf32> to vector<16x128xbf16>
    %c0_47 = arith.constant 0 : index
    %c0_48 = arith.constant 0 : index
    %105 = vector.load %arg4[%c0_47, %c0_48] : memref<128x384xbf16, #tpu.memory_space<vmem>>, vector<128x384xbf16>
    %cst_49 = arith.constant dense<0.000000e+00> : vector<16x384xf32>
    %106 = tpu.matmul %104, %105, %cst_49 {dimension_numbers = #tpu.dot_dimension_numbers<[1], [0], [0], [1], [0, 0, 1, 1], [], []>} : vector<16x128xbf16>, vector<128x384xbf16>, vector<16x384xf32> -> vector<16x384xf32>
    %c0_50 = arith.constant 0 : index
    %c0_51 = arith.constant 0 : index
    %107 = vector.load %arg6[%c0_50, %c0_51] : memref<1x384xf32, #tpu.memory_space<vmem>>, vector<1x384xf32>
    %108 = vector.broadcast %107 : vector<1x384xf32> to vector<16x384xf32>
    %109 = arith.addf %106, %108 : vector<16x384xf32>
    %110 = vector.extract_strided_slice %103 {offsets = [0, 0], sizes = [16, 128], strides = [1, 1]} : vector<16x384xf32> to vector<16x128xf32>
    %111 = vector.extract_strided_slice %109 {offsets = [0, 0], sizes = [16, 128], strides = [1, 1]} : vector<16x384xf32> to vector<16x128xf32>
    %112 = arith.addf %110, %111 : vector<16x128xf32>
    %cst_52 = arith.constant 5.000000e-01 : f32
    %113 = vector.broadcast %cst_52 : f32 to vector<16x128xf32>
    %114 = arith.mulf %113, %112 : vector<16x128xf32>
    %115 = math.tanh %114 : vector<16x128xf32>
    %cst_53 = arith.constant 1.000000e+00 : f32
    %116 = vector.broadcast %cst_53 : f32 to vector<16x128xf32>
    %117 = arith.addf %116, %115 : vector<16x128xf32>
    %cst_54 = arith.constant 5.000000e-01 : f32
    %118 = vector.broadcast %cst_54 : f32 to vector<16x128xf32>
    %119 = arith.mulf %118, %117 : vector<16x128xf32>
    %120 = vector.extract_strided_slice %103 {offsets = [0, 128], sizes = [16, 128], strides = [1, 1]} : vector<16x384xf32> to vector<16x128xf32>
    %121 = vector.extract_strided_slice %109 {offsets = [0, 128], sizes = [16, 128], strides = [1, 1]} : vector<16x384xf32> to vector<16x128xf32>
    %122 = arith.addf %120, %121 : vector<16x128xf32>
    %cst_55 = arith.constant 5.000000e-01 : f32
    %123 = vector.broadcast %cst_55 : f32 to vector<16x128xf32>
    %124 = arith.mulf %123, %122 : vector<16x128xf32>
    %125 = math.tanh %124 : vector<16x128xf32>
    %cst_56 = arith.constant 1.000000e+00 : f32
    %126 = vector.broadcast %cst_56 : f32 to vector<16x128xf32>
    %127 = arith.addf %126, %125 : vector<16x128xf32>
    %cst_57 = arith.constant 5.000000e-01 : f32
    %128 = vector.broadcast %cst_57 : f32 to vector<16x128xf32>
    %129 = arith.mulf %128, %127 : vector<16x128xf32>
    %130 = vector.extract_strided_slice %103 {offsets = [0, 256], sizes = [16, 128], strides = [1, 1]} : vector<16x384xf32> to vector<16x128xf32>
    %131 = vector.extract_strided_slice %109 {offsets = [0, 256], sizes = [16, 128], strides = [1, 1]} : vector<16x384xf32> to vector<16x128xf32>
    %132 = arith.mulf %119, %131 : vector<16x128xf32>
    %133 = arith.addf %130, %132 : vector<16x128xf32>
    %134 = math.tanh %133 : vector<16x128xf32>
    %cst_58 = arith.constant 1.000000e+00 : f32
    %135 = vector.broadcast %cst_58 : f32 to vector<16x128xf32>
    %136 = arith.subf %135, %129 : vector<16x128xf32>
    %137 = arith.mulf %136, %134 : vector<16x128xf32>
    %138 = arith.mulf %129, %95 : vector<16x128xf32>
    %139 = arith.addf %137, %138 : vector<16x128xf32>
    %140 = arith.truncf %139 : vector<16x128xf32> to vector<16x128xbf16>
    %141 = arith.index_cast %c2_i32 : i32 to index
    %c0_59 = arith.constant 0 : index
    %c0_60 = arith.constant 0 : index
    %142 = vector.load %arg7[%141, %c0_59, %c0_60] : memref<4x16x128xbf16, #tpu.memory_space<vmem>>, vector<1x16x128xbf16>
    %143 = vector.shape_cast %142 : vector<1x16x128xbf16> to vector<16x128xbf16>
    %144 = vector.shape_cast %140 : vector<16x128xbf16> to vector<1x16x128xbf16>
    tpu.vector_store %arg7[%141, %c0_59, %c0_60], %144 {strides = array<i32>} : memref<4x16x128xbf16, #tpu.memory_space<vmem>>, vector<1x16x128xbf16>,
    %c3_i32 = arith.constant 3 : i32
    %145 = arith.index_cast %c3_i32 : i32 to index
    %c0_61 = arith.constant 0 : index
    %c0_62 = arith.constant 0 : index
    %146 = vector.load %arg9[%145, %c0_61, %c0_62] : memref<4x16x384xf32, #tpu.memory_space<vmem>>, vector<1x16x384xf32>
    %147 = vector.shape_cast %146 : vector<1x16x384xf32> to vector<16x384xf32>
    %148 = arith.truncf %139 : vector<16x128xf32> to vector<16x128xbf16>
    %c0_63 = arith.constant 0 : index
    %c0_64 = arith.constant 0 : index
    %149 = vector.load %arg4[%c0_63, %c0_64] : memref<128x384xbf16, #tpu.memory_space<vmem>>, vector<128x384xbf16>
    %cst_65 = arith.constant dense<0.000000e+00> : vector<16x384xf32>
    %150 = tpu.matmul %148, %149, %cst_65 {dimension_numbers = #tpu.dot_dimension_numbers<[1], [0], [0], [1], [0, 0, 1, 1], [], []>} : vector<16x128xbf16>, vector<128x384xbf16>, vector<16x384xf32> -> vector<16x384xf32>
    %c0_66 = arith.constant 0 : index
    %c0_67 = arith.constant 0 : index
    %151 = vector.load %arg6[%c0_66, %c0_67] : memref<1x384xf32, #tpu.memory_space<vmem>>, vector<1x384xf32>
    %152 = vector.broadcast %151 : vector<1x384xf32> to vector<16x384xf32>
    %153 = arith.addf %150, %152 : vector<16x384xf32>
    %154 = vector.extract_strided_slice %147 {offsets = [0, 0], sizes = [16, 128], strides = [1, 1]} : vector<16x384xf32> to vector<16x128xf32>
    %155 = vector.extract_strided_slice %153 {offsets = [0, 0], sizes = [16, 128], strides = [1, 1]} : vector<16x384xf32> to vector<16x128xf32>
    %156 = arith.addf %154, %155 : vector<16x128xf32>
    %cst_68 = arith.constant 5.000000e-01 : f32
    %157 = vector.broadcast %cst_68 : f32 to vector<16x128xf32>
    %158 = arith.mulf %157, %156 : vector<16x128xf32>
    %159 = math.tanh %158 : vector<16x128xf32>
    %cst_69 = arith.constant 1.000000e+00 : f32
    %160 = vector.broadcast %cst_69 : f32 to vector<16x128xf32>
    %161 = arith.addf %160, %159 : vector<16x128xf32>
    %cst_70 = arith.constant 5.000000e-01 : f32
    %162 = vector.broadcast %cst_70 : f32 to vector<16x128xf32>
    %163 = arith.mulf %162, %161 : vector<16x128xf32>
    %164 = vector.extract_strided_slice %147 {offsets = [0, 128], sizes = [16, 128], strides = [1, 1]} : vector<16x384xf32> to vector<16x128xf32>
    %165 = vector.extract_strided_slice %153 {offsets = [0, 128], sizes = [16, 128], strides = [1, 1]} : vector<16x384xf32> to vector<16x128xf32>
    %166 = arith.addf %164, %165 : vector<16x128xf32>
    %cst_71 = arith.constant 5.000000e-01 : f32
    %167 = vector.broadcast %cst_71 : f32 to vector<16x128xf32>
    %168 = arith.mulf %167, %166 : vector<16x128xf32>
    %169 = math.tanh %168 : vector<16x128xf32>
    %cst_72 = arith.constant 1.000000e+00 : f32
    %170 = vector.broadcast %cst_72 : f32 to vector<16x128xf32>
    %171 = arith.addf %170, %169 : vector<16x128xf32>
    %cst_73 = arith.constant 5.000000e-01 : f32
    %172 = vector.broadcast %cst_73 : f32 to vector<16x128xf32>
    %173 = arith.mulf %172, %171 : vector<16x128xf32>
    %174 = vector.extract_strided_slice %147 {offsets = [0, 256], sizes = [16, 128], strides = [1, 1]} : vector<16x384xf32> to vector<16x128xf32>
    %175 = vector.extract_strided_slice %153 {offsets = [0, 256], sizes = [16, 128], strides = [1, 1]} : vector<16x384xf32> to vector<16x128xf32>
    %176 = arith.mulf %163, %175 : vector<16x128xf32>
    %177 = arith.addf %174, %176 : vector<16x128xf32>
    %178 = math.tanh %177 : vector<16x128xf32>
    %cst_74 = arith.constant 1.000000e+00 : f32
    %179 = vector.broadcast %cst_74 : f32 to vector<16x128xf32>
    %180 = arith.subf %179, %173 : vector<16x128xf32>
    %181 = arith.mulf %180, %178 : vector<16x128xf32>
    %182 = arith.mulf %173, %139 : vector<16x128xf32>
    %183 = arith.addf %181, %182 : vector<16x128xf32>
    %184 = arith.truncf %183 : vector<16x128xf32> to vector<16x128xbf16>
    %185 = arith.index_cast %c3_i32 : i32 to index
    %c0_75 = arith.constant 0 : index
    %c0_76 = arith.constant 0 : index
    %186 = vector.load %arg7[%185, %c0_75, %c0_76] : memref<4x16x128xbf16, #tpu.memory_space<vmem>>, vector<1x16x128xbf16>
    %187 = vector.shape_cast %186 : vector<1x16x128xbf16> to vector<16x128xbf16>
    %188 = vector.shape_cast %184 : vector<16x128xbf16> to vector<1x16x128xbf16>
    tpu.vector_store %arg7[%185, %c0_75, %c0_76], %188 {strides = array<i32>} : memref<4x16x128xbf16, #tpu.memory_space<vmem>>, vector<1x16x128xbf16>,
    %c4_i32 = arith.constant 4 : i32
    %c0_77 = arith.constant 0 : index
    %c0_78 = arith.constant 0 : index
    %189 = vector.load %arg10[%c0_77, %c0_78] : memref<16x128xf32, #tpu.memory_space<vmem>>, vector<16x128xf32>
    tpu.vector_store %arg10[%c0_77, %c0_78], %183 {strides = array<i32>} : memref<16x128xf32, #tpu.memory_space<vmem>>, vector<16x128xf32>,
    %c0_i32_79 = arith.constant 0 : i32
    %190 = arith.cmpi eq, %arg1, %c0_i32_79 : i32
    %191 = arith.extui %190 : i1 to i32
    %c0_i32_80 = arith.constant 0 : i32
    %192 = arith.cmpi ne, %191, %c0_i32_80 : i32
    scf.if %192 {
      %c0_81 = arith.constant 0 : index
      %c0_82 = arith.constant 0 : index
      %193 = vector.load %arg8[%c0_81, %c0_82] : memref<16x128xf32, #tpu.memory_space<vmem>>, vector<16x128xf32>
      tpu.vector_store %arg8[%c0_81, %c0_82], %183 {strides = array<i32>} : memref<16x128xf32, #tpu.memory_space<vmem>>, vector<16x128xf32>,
    } else {
    }
    return
  }
  func.func @transform_0(%arg0: i32, %arg1: i32) -> (i32, i32, i32) {
    %c0_i32 = arith.constant 0 : i32
    %c0_i32_0 = arith.constant 0 : i32
    return %arg1, %arg0, %c0_i32 : i32, i32, i32
  }
  func.func @transform_1(%arg0: i32, %arg1: i32) -> (i32, i32) {
    %c0_i32 = arith.constant 0 : i32
    %c0_i32_0 = arith.constant 0 : i32
    %c0_i32_1 = arith.constant 0 : i32
    return %c0_i32, %c0_i32_0 : i32, i32
  }
  func.func @transform_2(%arg0: i32, %arg1: i32) -> (i32, i32) {
    %c0_i32 = arith.constant 0 : i32
    %c0_i32_0 = arith.constant 0 : i32
    %c0_i32_1 = arith.constant 0 : i32
    return %c0_i32, %c0_i32_0 : i32, i32
  }
  func.func @transform_3(%arg0: i32, %arg1: i32) -> (i32, i32) {
    %c0_i32 = arith.constant 0 : i32
    %c0_i32_0 = arith.constant 0 : i32
    %c0_i32_1 = arith.constant 0 : i32
    return %c0_i32, %c0_i32_0 : i32, i32
  }
  func.func @transform_4(%arg0: i32, %arg1: i32) -> (i32, i32) {
    %c0_i32 = arith.constant 0 : i32
    %c0_i32_0 = arith.constant 0 : i32
    %c0_i32_1 = arith.constant 0 : i32
    return %c0_i32, %c0_i32_0 : i32, i32
  }
  func.func @transform_5(%arg0: i32, %arg1: i32) -> (i32, i32, i32) {
    %c0_i32 = arith.constant 0 : i32
    %c0_i32_0 = arith.constant 0 : i32
    return %arg1, %arg0, %c0_i32 : i32, i32, i32
  }
  func.func @transform_6(%arg0: i32, %arg1: i32) -> (i32, i32) {
    %c0_i32 = arith.constant 0 : i32
    %c0_i32_0 = arith.constant 0 : i32
    return %arg0, %c0_i32 : i32, i32
  }
}

</mosaic_0001>

<bundles_post_ra>
// kernel: rnn_based_encoder_forward.3
= control target key start
LH: loop header
LB: loop body
LE: loop exit
PB: predicated region body
PF: predicated region fallthrough
CT: control target
= control target key end

     0   :  { %v1463_v1 = vmov 0   ;;  %v1464_v34 = vmov 0.0   ;;  %vm1465_vm0 = vmmov 0   ;;  %v1466_v54 = vmov 0.0|0.0   ;;  %s1921_s1 = inlined_call_operand.vmem [shape: bf16[128,384], index: 1, kind: input, shape index: {}]   ;;  %s1922_s0 = inlined_call_operand.vmem [shape: bf16[4,16,128], index: 0, kind: input, shape index: {}]   ;;  %s1923_s2 = inlined_call_operand.vmem [shape: bf16[128,384], index: 2, kind: input, shape index: {}]   ;;  %s1924_s3 = inlined_call_operand.vmem [shape: f32[1,384], index: 3, kind: input, shape index: {}]   ;;  %s1925_s4 = inlined_call_operand.vmem [shape: f32[1,384], index: 4, kind: input, shape index: {}]   ;;  %s1926_s5 = inlined_call_operand.vmem [shape: f32[16,128], index: 5, kind: output, shape index: {}]  }
   0x1   :  { %v1347_v0 = vld [vmem:[%s1921_s1 + $0x4] ss:$12 sps:$4 sm:$0xff]   ;;  %268 = vmatprep.mubr.bf16.mxu0 %v1463_v1  ;;  %v1349_v2 = vld [vmem:[%s1921_s1] ss:$12 sps:$4 sm:$0xff]   ;;  %v1350_v3 = vld [vmem:[%s1921_s1 + $0x1c] ss:$12 sps:$4 sm:$0xff]   ;;  %v69_v55 = vlaneseq }
   0x2   :  { %236 = vmatprep.subr.bf16.mxu0 %v1347_v0  ;;  %v1352_v4 = vld [vmem:[%s1921_s1 + $0x18] ss:$12 sps:$4 sm:$0xff]   ;;  %v1353_v5 = vld [vmem:[%s1921_s1 + $0x34] ss:$12 sps:$4 sm:$0xff]   ;;  %v1355_v7 = vld [vmem:[%s1921_s1 + $0x30] ss:$12 sps:$4 sm:$0xff]  }
   0x3   :  { %237 = vmatpush1.bf16.msra.mxu0 %v1349_v2  ;;  %v1359_v6 = vld [vmem:[%s1921_s1 + $0x8] ss:$12 sps:$4 sm:$0xff]   ;;  %v1356_v8 = vld [vmem:[%s1921_s1 + $0x4c] ss:$12 sps:$4 sm:$0xff]   ;;  %v1360_v12 = vld [vmem:[%s1921_s1 + $0x64] ss:$12 sps:$4 sm:$0xff]  }
   0x4   :  { %238 = vmatprep.subr.bf16.mxu0 %v1350_v3  ;;  %1191 = vmatprep.subr.bf16.mxu1 %v1359_v6  ;;  %v1363_v9 = vld [vmem:[%s1921_s1 + $0x20] ss:$12 sps:$4 sm:$0xff]   ;;  %v1367_v10 = vld [vmem:[%s1921_s1 + $0x38] ss:$12 sps:$4 sm:$0xff]   ;;  %v1358_v11 = vld [vmem:[%s1921_s1 + $0x48] ss:$12 sps:$4 sm:$0xff]  }
   0x5   :  { %1192 = vmatpush3.bf16.msra.mxu1 %v1359_v6  ;;  %v1362_v13 = vld [vmem:[%s1921_s1 + $0x60] ss:$12 sps:$4 sm:$0xff]   ;;  %v1371_v14 = vld [vmem:[%s1921_s1 + $0x50] ss:$12 sps:$4 sm:$0xff]   ;;  %v1375_v17 = vld [vmem:[%s1921_s1 + $0x68] ss:$12 sps:$4 sm:$0xff]  }
   0x6   :  { %1193 = vmatprep.subr.bf16.mxu1 %v1363_v9  ;;  %v1364_v15 = vld [vmem:[%s1921_s1 + $0x7c] ss:$12 sps:$4 sm:$0xff]   ;;  %v1376_v16 = vld [vmem:[%s1922_s0] sm:$0xff]   ;;  %v1372_v22 = vld [vmem:[%s1921_s1 + $0xac] ss:$12 sps:$4 sm:$0xff]   ;;  %v70_v56 = vshrl.u32 %v69_v55, 7 }
   0x7   :  { %239 = vmatpush1.bf16.msra.mxu0 %v1352_v4  ;;  %1207 = vmatprep.mubr.bf16.mxu1 %v1376_v16  ;;  %v1366_v18 = vld [vmem:[%s1921_s1 + $0x78] ss:$12 sps:$4 sm:$0xff]   ;;  %v1368_v19 = vld [vmem:[%s1921_s1 + $0x94] ss:$12 sps:$4 sm:$0xff]   ;;  %v1370_v21 = vld [vmem:[%s1921_s1 + $0x90] ss:$12 sps:$4 sm:$0xff]  }
   0x8   :  { %240 = vmatprep.subr.bf16.mxu0 %v1353_v5  ;;  %v1380_v20 = vld [vmem:[%s1921_s1 + $0x80] ss:$12 sps:$4 sm:$0xff]   ;;  %v1384_v23 = vld [vmem:[%s1921_s1 + $0x98] ss:$12 sps:$4 sm:$0xff]   ;;  %v1374_v24 = vld [vmem:[%s1921_s1 + $0xa8] ss:$12 sps:$4 sm:$0xff]  }
   0x9   :  { %1194 = vmatpush3.bf16.msra.mxu1 %v1363_v9  ;;  %v1573_v25 = vld [vmem:[%s1923_s2 + $0x4] ss:$12 sps:$4 sm:$0xff]   ;;  %v1581_v27 = vld [vmem:[%s1923_s2] ss:$12 sps:$4 sm:$0xff]   ;;  %v1587_v28 = vld [vmem:[%s1923_s2 + $0x1c] ss:$12 sps:$4 sm:$0xff]  }
   0xa   :  { %1195 = vmatprep.subr.bf16.mxu1 %v1367_v10  ;;  %v1389_v26 = vld [vmem:[%s1921_s1 + $0xb0] ss:$12 sps:$4 sm:$0xff]   ;;  %v1593_v29 = vld [vmem:[%s1923_s2 + $0x18] ss:$12 sps:$4 sm:$0xff]   ;;  %v1385_v30 = vld [vmem:[%s1922_s0 + $0x8] sm:$0xff]   ;;  %v79_v57 = vsub.s32 2, %v70_v56 }
   0xb   :  { %241 = vmatpush1.bf16.msra.mxu0 %v1355_v7  ;;  %v1603_v31 = vld [vmem:[%s1923_s2 + $0x34] ss:$12 sps:$4 sm:$0xff]   ;;  %v1613_v33 = vld [vmem:[%s1923_s2 + $0x30] ss:$12 sps:$4 sm:$0xff]   ;;  %v1624_v36 = vld [vmem:[%s1923_s2 + $0x4c] ss:$12 sps:$4 sm:$0xff]  }
   0xc   :  { %242 = vmatprep.subr.bf16.mxu0 %v1356_v8  ;;  %v1608_v32 = vld [vmem:[%s1923_s2 + $0x8] ss:$12 sps:$4 sm:$0xff]   ;;  %v1630_v37 = vld [vmem:[%s1923_s2 + $0x20] ss:$12 sps:$4 sm:$0xff]   ;;  %v1644_v39 = vld [vmem:[%s1923_s2 + $0x64] ss:$12 sps:$4 sm:$0xff]  }
   0xd   :  { %1196 = vmatpush3.bf16.msra.mxu1 %v1367_v10  ;;  %v1393_v35 = vld [vmem:[%s1922_s0 + $0x10] sm:$0xff]   ;;  %v1650_v40 = vld [vmem:[%s1923_s2 + $0x38] ss:$12 sps:$4 sm:$0xff]   ;;  %v1660_v42 = vld [vmem:[%s1923_s2 + $0x60] ss:$12 sps:$4 sm:$0xff]  }
   0xe   :  { %1197 = vmatprep.subr.bf16.mxu1 %v1371_v14  ;;  %v1637_v38 = vld [vmem:[%s1923_s2 + $0x48] ss:$12 sps:$4 sm:$0xff]   ;;  %v1402_v41 = vld [vmem:[%s1922_s0 + $0x18] sm:$0xff]   ;;  %v1713_v50 = vld [vmem:[%s1923_s2 + $0x80] ss:$12 sps:$4 sm:$0xff]  }
   0xf   :  { %243 = vmatpush1.bf16.msra.mxu0 %v1358_v11  ;;  %v1666_v43 = vld [vmem:[%s1923_s2 + $0x7c] ss:$12 sps:$4 sm:$0xff]   ;;  %v1681_v45 = vld [vmem:[%s1923_s2 + $0x78] ss:$12 sps:$4 sm:$0xff]   ;;  %v1688_v46 = vld [vmem:[%s1923_s2 + $0x94] ss:$12 sps:$4 sm:$0xff]  }
  0x10   :  { %244 = vmatprep.subr.bf16.mxu0 %v1360_v12  ;;  %v1672_v44 = vld [vmem:[%s1923_s2 + $0x50] ss:$12 sps:$4 sm:$0xff]   ;;  %v1694_v47 = vld [vmem:[%s1923_s2 + $0x68] ss:$12 sps:$4 sm:$0xff]   ;;  %v1707_v49 = vld [vmem:[%s1923_s2 + $0xac] ss:$12 sps:$4 sm:$0xff]  }
  0x11   :  { %1198 = vmatpush3.bf16.msra.mxu1 %v1371_v14  ;;  %v1701_v48 = vld [vmem:[%s1923_s2 + $0x90] ss:$12 sps:$4 sm:$0xff]   ;;  %v1720_v51 = vld [vmem:[%s1923_s2 + $0xa8] ss:$12 sps:$4 sm:$0xff]   ;;  %v1728_v52 = vld [vmem:[%s1923_s2 + $0x98] ss:$12 sps:$4 sm:$0xff]  }
  0x12   :  { %1199 = vmatprep.subr.bf16.mxu1 %v1375_v17  ;;  %v1737_v53 = vld [vmem:[%s1923_s2 + $0xb0] ss:$12 sps:$4 sm:$0xff]   ;;  %v67_v58 = vld [vmem:[%s1924_s3] sm:$0x7]  ;;  %v71_v11 = vsub.s32 0, %v70_v56 }
  0x13   :  { %245 = vmatpush1.bf16.msra.mxu0 %v1362_v13  ;;  %v80_v59 = vrot.slane %v67_v58, %v79_v57  ;;  %v439_v12 = vld [vmem:[%s1925_s4] sm:$0x7]  ;;  %v75_v13 = vsub.s32 1, %v70_v56 }
  0x14   :  { %246 = vmatprep.subr.bf16.mxu0 %v1364_v15  ;;  %v72_v14 = vrot.slane %v67_v58, %v71_v11  ;;  %v444_v15 = vrot.slane %v439_v12, %v71_v11 }
  0x15   :  { %1200 = vmatpush3.bf16.msra.mxu1 %v1375_v17  ;;  %v448_v17 = vrot.slane %v439_v12, %v75_v13 }
  0x16   :  { %1201 = vmatprep.subr.bf16.mxu1 %v1380_v20 }
  0x17   :  { %247 = vmatpush1.bf16.msra.mxu0 %v1366_v18  ;;  %v1795_v18 = vadd.f32 %v444_v15, %v72_v14 }
  0x18   :  { %248 = vmatprep.subr.bf16.mxu0 %v1368_v19 }
  0x19   :  { %1202 = vmatpush3.bf16.msra.mxu1 %v1380_v20 }
  0x1a   :  { %1203 = vmatprep.subr.bf16.mxu1 %v1384_v23 }
  0x1b   :  { %249 = vmatpush1.bf16.msra.mxu0 %v1370_v21 }
  0x1c   :  { %250 = vmatprep.subr.bf16.mxu0 %v1372_v22 }
  0x1d   :  { %1204 = vmatpush3.bf16.msra.mxu1 %v1384_v23 }
  0x1e   :  { %1205 = vmatprep.subr.bf16.mxu1 %v1389_v26 }
  0x1f   :  { %251 = vmatpush1.bf16.msra.mxu0 %v1374_v24 }
  0x20   :  { %584 = vmatprep.subr.bf16.mxu0 %v1573_v25 }
  0x21   :  { %1206 = vmatpush3.bf16.msra.mxu1 %v1389_v26 }
  0x22   :  { %269 = vmatmul.mubr.bf16.vlgmr.msra.gmra.mrb[0].mxu0 %v1376_v16  ;;  %1215 = vmatprep.subr.bf16.mxu1 %v1464_v34  ;;  %v76_v16 = vrot.slane %v67_v58, %v75_v13 }
  0x23   :  { %585 = vmatpush1.bf16.msra.mxu0 %v1581_v27  ;;  %278 = vmatprep.mubr.bf16.mxu0 %v1463_v1 }
  0x24   :  { %586 = vmatprep.subr.bf16.mxu0 %v1587_v28  ;;  %1208 = vmatmul.mubr.bf16.vlgmr.msra.gmra.mrb[0].mxu1 %v1385_v30  ;;  %v1797_v20 = vadd.f32 %v448_v17, %v76_v16 }
  0x25   :  { %1216 = vmatpush3.bf16.msra.mxu1 %v1608_v32  ;;  %1211 = vmatprep.mubr.bf16.mxu1 %v1393_v35 }
  0x26   :  { %1217 = vmatprep.subr.bf16.mxu1 %v1464_v34 }
  0x27   :  { %587 = vmatpush1.bf16.msra.mxu0 %v1593_v29 }
  0x28   :  { %588 = vmatprep.subr.bf16.mxu0 %v1603_v31 }
  0x29   :  { %1218 = vmatpush3.bf16.msra.mxu1 %v1630_v37 }
  0x2a   :  { %279 = vmatmul.mubr.bf16.gmra.mrb[4].mxu0 %v1385_v30  ;;  %1219 = vmatprep.subr.bf16.mxu1 %v1464_v34 }
  0x2b   :  { %589 = vmatpush1.bf16.msra.mxu0 %v1613_v33  ;;  %288 = vmatprep.mubr.bf16.mxu0 %v1463_v1 }
  0x2c   :  { %590 = vmatprep.subr.bf16.mxu0 %v1624_v36  ;;  %1212 = vmatmul.mubr.bf16.gmra.mrb[4].mxu1 %v1402_v41 }
  0x2d   :  { %1220 = vmatpush3.bf16.msra.mxu1 %v1650_v40  ;;  %1231 = vmatprep.mubr.msk.bf16.mxu1 %vm1465_vm0, %v1464_v34 }
  0x2e   :  { %1221 = vmatprep.subr.bf16.mxu1 %v1464_v34 }
  0x2f   :  { %591 = vmatpush1.bf16.msra.mxu0 %v1637_v38 }
  0x30   :  { %592 = vmatprep.subr.bf16.mxu0 %v1644_v39 }
  0x31   :  { %1222 = vmatpush3.bf16.msra.mxu1 %v1672_v44 }
  0x32   :  { %289 = vmatmul.mubr.bf16.gmra.mrb[8].mxu0 %v1393_v35  ;;  %1223 = vmatprep.subr.bf16.mxu1 %v1464_v34 }
  0x33   :  { %593 = vmatpush1.bf16.msra.mxu0 %v1660_v42  ;;  %298 = vmatprep.mubr.bf16.mxu0 %v1463_v1 }
  0x34   :  { %594 = vmatprep.subr.bf16.mxu0 %v1666_v43 }
  0x35   :  { %1224 = vmatpush3.bf16.msra.mxu1 %v1694_v47 }
  0x36   :  { %1225 = vmatprep.subr.bf16.mxu1 %v1464_v34 }
  0x37   :  { %595 = vmatpush1.bf16.msra.mxu0 %v1681_v45 }
  0x38   :  { %596 = vmatprep.subr.bf16.mxu0 %v1688_v46 }
  0x39   :  { %1226 = vmatpush3.bf16.msra.mxu1 %v1713_v50 }
  0x3a   :  { %299 = vmatmul.mubr.bf16.gmra.mrb[12].mxu0 %v1402_v41  ;;  %1227 = vmatprep.subr.bf16.mxu1 %v1464_v34 }
  0x3b   :  { %597 = vmatpush1.bf16.msra.mxu0 %v1701_v48  ;;  %616 = vmatprep.mubr.bf16.mxu0 %v1463_v1 }
  0x3c   :  { %598 = vmatprep.subr.bf16.mxu0 %v1707_v49 }
  0x3d   :  { %1228 = vmatpush3.bf16.msra.mxu1 %v1728_v52 }
  0x3e   :  { %1229 = vmatprep.subr.bf16.mxu1 %v1464_v34 }
  0x3f   :  { %599 = vmatpush1.bf16.msra.mxu0 %v1720_v51 }
  0x40   :  { %710 = vmatprep.subr.bf16.mxu0 %v1573_v25 }
  0x41   :  { %1230 = vmatpush3.bf16.msra.mxu1 %v1737_v53 }
  0x42   :  { %617 = vmatmul.mubr.bf16.vlgmr.msra.gmra.mrb[0].mxu0 %v1466_v54  ;;  %1235 = vmatprep.subr.bf16.mxu1 %v1464_v34 }
  0x43   :  { %711 = vmatpush1.bf16.msra.mxu0 %v1581_v27  ;;  %742 = vmatprep.mubr.bf16.mxu0 %v1463_v1 }
  0x44   :  { %712 = vmatprep.subr.bf16.mxu0 %v1587_v28  ;;  %1232 = vmatmul.mubr.bf16.vlgmr.msra.gmra.mrb[8].mxu1 %v1466_v54 }
  0x45   :  { %1236 = vmatpush3.bf16.msra.mxu1 %v1608_v32  ;;  %1251 = vmatprep.mubr.msk.bf16.mxu1 %vm1465_vm0, %v1464_v34 }
  0x46   :  { %1237 = vmatprep.subr.bf16.mxu1 %v1464_v34 }
  0x47   :  { %713 = vmatpush1.bf16.msra.mxu0 %v1593_v29 }
  0x48   :  { %714 = vmatprep.subr.bf16.mxu0 %v1603_v31 }
  0x49   :  { %1238 = vmatpush3.bf16.msra.mxu1 %v1630_v37 }
  0x4a   :  { %1239 = vmatprep.subr.bf16.mxu1 %v1464_v34 }
  0x4b   :  { %715 = vmatpush1.bf16.msra.mxu0 %v1613_v33 }
  0x4c   :  { %716 = vmatprep.subr.bf16.mxu0 %v1624_v36 }
  0x4d   :  { %1240 = vmatpush3.bf16.msra.mxu1 %v1650_v40 }
  0x4e   :  { %1241 = vmatprep.subr.bf16.mxu1 %v1464_v34 }
  0x4f   :  { %717 = vmatpush1.bf16.msra.mxu0 %v1637_v38 }
  0x50   :  { %718 = vmatprep.subr.bf16.mxu0 %v1644_v39 }
  0x51   :  { %1242 = vmatpush3.bf16.msra.mxu1 %v1672_v44 }
  0x52   :  { %1243 = vmatprep.subr.bf16.mxu1 %v1464_v34 }
  0x53   :  { %719 = vmatpush1.bf16.msra.mxu0 %v1660_v42 }
  0x54   :  { %720 = vmatprep.subr.bf16.mxu0 %v1666_v43 }
  0x55   :  { %1244 = vmatpush3.bf16.msra.mxu1 %v1694_v47 }
  0x56   :  { %1245 = vmatprep.subr.bf16.mxu1 %v1464_v34 }
  0x57   :  { %721 = vmatpush1.bf16.msra.mxu0 %v1681_v45 }
  0x58   :  { %722 = vmatprep.subr.bf16.mxu0 %v1688_v46 }
  0x59   :  { %1246 = vmatpush3.bf16.msra.mxu1 %v1713_v50 }
  0x5a   :  { %1247 = vmatprep.subr.bf16.mxu1 %v1464_v34 }
  0x5b   :  { %723 = vmatpush1.bf16.msra.mxu0 %v1701_v48 }
  0x5c   :  { %724 = vmatprep.subr.bf16.mxu0 %v1707_v49 }
  0x5d   :  { %1248 = vmatpush3.bf16.msra.mxu1 %v1728_v52 }
  0x5e   :  { %1249 = vmatprep.subr.bf16.mxu1 %v1464_v34 }
  0x5f   :  { %725 = vmatpush1.bf16.msra.mxu0 %v1720_v51 }
  0x60   :  { %836 = vmatprep.subr.bf16.mxu0 %v1573_v25 }
  0x61   :  { %1250 = vmatpush3.bf16.msra.mxu1 %v1737_v53 }
  0x62   :  { %1255 = vmatprep.subr.bf16.mxu1 %v1464_v34 }
  0xf7   :  { %v1209_v60 = vpop.f32.mrb[0].mxu1 }
  0xf8   :  { %v1780_v61 = vadd.f32 %v1209_v60, %v80_v59  ;;  %v343_v62 = vpop.f32.mrb[1].mxu1 }
  0xf9   :  { %v1210_v63 = vpop.f32.mrb[2].mxu1  ;;  %v344_v16 = vadd.f32 %v343_v62, %v80_v59 }
  0xfa   :  { %v1782_v0 = vadd.f32 %v1210_v63, %v80_v59  ;;  %v346_v2 = vpop.f32.mrb[3].mxu1 }
  0xff   :  { %v1213_v3 = vpop.f32.mrb[4].mxu1 }
 0x100   :  { %v1784_v4 = vadd.f32 %v1213_v3, %v80_v59  ;;  %v359_v5 = vpop.f32.mrb[5].mxu1 }
 0x101   :  { %v1786_v6 = vadd.f32 %v359_v5, %v80_v59  ;;  %v1214_v7 = vpop.f32.mrb[6].mxu1  ;;  %v1803_v5 = vrot.slane %v439_v12, %v79_v57 }
 0x102   :  { %v1788_v8 = vadd.f32 %v1214_v7, %v80_v59  ;;  %v362_v9 = vpop.f32.mrb[7].mxu1 }
 0x103   :  { %v1790_v10 = vadd.f32 %v362_v9, %v80_v59 }
 0x115   :  { %v618_v19 = vpop.f32.mrb[0].mxu0 }
 0x116   :  { %v1296_v21 = vadd.f32 %v1795_v18, %v618_v19  ;;  %v620_v22 = vpop.f32.mrb[1].mxu0 }
 0x117   :  { %v622_v23 = vpop.f32.mrb[2].mxu0  ;;  %v1298_v35 = vadd.f32 %v1797_v20, %v620_v22  ;;  %v661_v55 = vpop.f32.mrb[8].mxu1 }
 0x118   :  { %v670_v24 = vmul.f32 0.5, %v1296_v21  ;;  %v1300_v26 = vadd.f32 %v1795_v18, %v622_v23  ;;  %v624_v30 = vpop.f32.mrb[3].mxu0  ;;  %v1233_v56 = vpop.f32.mrb[9].mxu1  ;;  %v662_v11 = vadd.f32 %v661_v55, %v1803_v5  ;;  %v347_v23 = vadd.f32 %v346_v2, %v80_v59 }
 0x119   :  { %v1302_v54 = vadd.f32 %v1797_v20, %v624_v30  ;;  %v680_v58 = vmul.f32 0.5, %v1298_v35  ;;  %v664_v60 = vpop.f32.mrb[10].mxu1 }
 0x11a   :  { %1415 = vtanh.f32 %v670_v24  ;;  %v671_v41 = vmul.f32 0.5, %v1300_v26  ;;  %v1234_v63 = vpop.f32.mrb[11].mxu1  ;;  %v665_v19 = vadd.f32 %v664_v60, %v1803_v5 }
 0x11b   :  { %v681_v3 = vmul.f32 0.5, %v1302_v54 }
 0x11c   :  { %1417 = vtanh.f32 %v671_v41 }
 0x11d   :  { %1419 = vtanh.f32 %v680_v58 }
 0x11e   :  { %1421 = vtanh.f32 %v681_v3 }
 0x124   :  { %v1416_v7 = vpop.eup %1415 }
 0x125   :  { %v674_v9 = vadd.f32 1.0, %v1416_v7 }
 0x126   :  { %v1418_v13 = vpop.eup %1417 }
 0x127   :  { %v675_v14 = vadd.f32 1.0, %v1418_v13  ;;  %v676_v15 = vmul.f32 0.5, %v674_v9  ;;  %v1420_v22 = vpop.eup %1419 }
 0x128   :  { %v1422_v30 = vpop.eup %1421  ;;  %v684_v12 = vadd.f32 1.0, %v1420_v22 }
 0x129   :  { %v688_v17 = vmul.f32 %v676_v15, %v662_v11  ;;  %v677_v21 = vmul.f32 0.5, %v675_v14  ;;  %v685_v35 = vadd.f32 1.0, %v1422_v30 }
 0x12a   :  { %v686_v41 = vmul.f32 0.5, %v684_v12 }
 0x12b   :  { %v690_v24 = vadd.f32 %v688_v17, %v344_v16  ;;  %v689_v26 = vmul.f32 %v677_v21, %v665_v19  ;;  %v687_v54 = vmul.f32 0.5, %v685_v35 }
 0x12c   :  { %v694_v55 = vsub.f32 1.0, %v686_v41  ;;  %v698_v58 = vmul.f32 0.0, %v686_v41 }
 0x12d   :  { %1423 = vtanh.f32 %v690_v24  ;;  %v691_v57 = vadd.f32 %v689_v26, %v347_v23  ;;  %v695_v62 = vsub.f32 1.0, %v687_v54  ;;  %v699_v60 = vmul.f32 0.0, %v687_v54 }
 0x12f   :  { %1425 = vtanh.f32 %v691_v57 }
 0x137   :  { %v1424_v56 = vpop.eup %1423 }
 0x138   :  { %v696_v63 = vmul.f32 %v1424_v56, %v694_v55 }
 0x139   :  { %v1426_v3 = vpop.eup %1425 }
 0x13a   :  { %v697_v7 = vmul.f32 %v1426_v3, %v695_v62  ;;  %v1807_v9 = vadd.f32 %v698_v58, %v696_v63 }
 0x13c   :  { %v1809_v59 = vadd.f32 %v699_v60, %v697_v7 }
 0x13e   :  { %v709_v2 = vpack.c.bf16 %v1809_v59, %v1807_v9 }
 0x140   :  { %743 = vmatmul.mubr.bf16.vlgmr.msra.gmra.mrb[4].mxu0 %v709_v2  ;;  %1252 = vmatmul.mubr.bf16.vlgmr.msra.gmra.mrb[12].mxu1 %v709_v2 }
 0x141   :  { %837 = vmatpush1.bf16.msra.mxu0 %v1581_v27  ;;  %1256 = vmatpush3.bf16.msra.mxu1 %v1608_v32 }
 0x142   :  { %838 = vmatprep.subr.bf16.mxu0 %v1587_v28  ;;  %1257 = vmatprep.subr.bf16.mxu1 %v1464_v34 }
 0x143   :  { %868 = vmatprep.mubr.bf16.mxu0 %v1463_v1  ;;  %1271 = vmatprep.mubr.msk.bf16.mxu1 %vm1465_vm0, %v1464_v34 }
 0x145   :  { %839 = vmatpush1.bf16.msra.mxu0 %v1593_v29  ;;  %1258 = vmatpush3.bf16.msra.mxu1 %v1630_v37 }
 0x146   :  { %840 = vmatprep.subr.bf16.mxu0 %v1603_v31  ;;  %1259 = vmatprep.subr.bf16.mxu1 %v1464_v34 }
 0x149   :  { %841 = vmatpush1.bf16.msra.mxu0 %v1613_v33  ;;  %1260 = vmatpush3.bf16.msra.mxu1 %v1650_v40 }
 0x14a   :  { %842 = vmatprep.subr.bf16.mxu0 %v1624_v36  ;;  %1261 = vmatprep.subr.bf16.mxu1 %v1464_v34 }
 0x14d   :  { %843 = vmatpush1.bf16.msra.mxu0 %v1637_v38  ;;  %1262 = vmatpush3.bf16.msra.mxu1 %v1672_v44 }
 0x14e   :  { %844 = vmatprep.subr.bf16.mxu0 %v1644_v39  ;;  %1263 = vmatprep.subr.bf16.mxu1 %v1464_v34 }
 0x151   :  { %845 = vmatpush1.bf16.msra.mxu0 %v1660_v42  ;;  %1264 = vmatpush3.bf16.msra.mxu1 %v1694_v47 }
 0x152   :  { %846 = vmatprep.subr.bf16.mxu0 %v1666_v43  ;;  %1265 = vmatprep.subr.bf16.mxu1 %v1464_v34 }
 0x155   :  { %847 = vmatpush1.bf16.msra.mxu0 %v1681_v45  ;;  %1266 = vmatpush3.bf16.msra.mxu1 %v1713_v50 }
 0x156   :  { %848 = vmatprep.subr.bf16.mxu0 %v1688_v46  ;;  %1267 = vmatprep.subr.bf16.mxu1 %v1464_v34 }
 0x159   :  { %849 = vmatpush1.bf16.msra.mxu0 %v1701_v48  ;;  %1268 = vmatpush3.bf16.msra.mxu1 %v1728_v52 }
 0x15a   :  { %850 = vmatprep.subr.bf16.mxu0 %v1707_v49  ;;  %1269 = vmatprep.subr.bf16.mxu1 %v1464_v34 }
 0x15d   :  { %851 = vmatpush1.bf16.msra.mxu0 %v1720_v51  ;;  %1270 = vmatpush3.bf16.msra.mxu1 %v1737_v53 }
 0x15e   :  { %962 = vmatprep.subr.bf16.mxu0 %v1573_v25  ;;  %1275 = vmatprep.subr.bf16.mxu1 %v1464_v34 }
 0x213   :  { %v744_v11 = vpop.f32.mrb[4].mxu0  ;;  %v787_v13 = vpop.f32.mrb[12].mxu1 }
 0x214   :  { %v1304_v14 = vadd.f32 %v1795_v18, %v744_v11  ;;  %v746_v15 = vpop.f32.mrb[5].mxu0  ;;  %v1253_v16 = vpop.f32.mrb[13].mxu1  ;;  %v788_v55 = vadd.f32 %v787_v13, %v1803_v5 }
 0x215   :  { %v748_v17 = vpop.f32.mrb[6].mxu0  ;;  %v790_v19 = vpop.f32.mrb[14].mxu1  ;;  %v1306_v26 = vadd.f32 %v1797_v20, %v746_v15 }
 0x216   :  { %v796_v21 = vmul.f32 0.5, %v1304_v14  ;;  %v1308_v22 = vadd.f32 %v1795_v18, %v748_v17  ;;  %v750_v23 = vpop.f32.mrb[7].mxu0  ;;  %v1254_v24 = vpop.f32.mrb[15].mxu1  ;;  %v791_v63 = vadd.f32 %v790_v19, %v1803_v5 }
 0x217   :  { %v1310_v25 = vadd.f32 %v1797_v20, %v750_v23  ;;  %v806_v57 = vmul.f32 0.5, %v1306_v26 }
 0x218   :  { %1427 = vtanh.f32 %v796_v21  ;;  %v797_v30 = vmul.f32 0.5, %v1308_v22 }
 0x219   :  { %v807_v12 = vmul.f32 0.5, %v1310_v25 }
 0x21a   :  { %1429 = vtanh.f32 %v797_v30 }
 0x21b   :  { %1431 = vtanh.f32 %v806_v57 }
 0x21c   :  { %1433 = vtanh.f32 %v807_v12 }
 0x222   :  { %v1428_v35 = vpop.eup %1427 }
 0x223   :  { %v800_v41 = vadd.f32 1.0, %v1428_v35 }
 0x224   :  { %v1430_v54 = vpop.eup %1429 }
 0x225   :  { %v802_v56 = vmul.f32 0.5, %v800_v41  ;;  %v801_v58 = vadd.f32 1.0, %v1430_v54  ;;  %v1432_v60 = vpop.eup %1431 }
 0x226   :  { %v1434_v11 = vpop.eup %1433  ;;  %v810_v15 = vadd.f32 1.0, %v1432_v60 }
 0x227   :  { %v814_v62 = vmul.f32 %v802_v56, %v788_v55  ;;  %v803_v3 = vmul.f32 0.5, %v801_v58  ;;  %v811_v16 = vadd.f32 1.0, %v1434_v11 }
 0x228   :  { %v812_v17 = vmul.f32 0.5, %v810_v15 }
 0x229   :  { %v816_v7 = vadd.f32 %v814_v62, %v1780_v61  ;;  %v815_v2 = vmul.f32 %v803_v3, %v791_v63  ;;  %v813_v21 = vmul.f32 0.5, %v811_v16 }
 0x22a   :  { %v820_v13 = vsub.f32 1.0, %v812_v17  ;;  %v824_v24 = vmul.f32 %v812_v17, %v1807_v9 }
 0x22b   :  { %1435 = vtanh.f32 %v816_v7  ;;  %v817_v14 = vadd.f32 %v815_v2, %v1782_v0  ;;  %v821_v19 = vsub.f32 1.0, %v813_v21  ;;  %v825_v25 = vmul.f32 %v813_v21, %v1809_v59 }
 0x22d   :  { %1437 = vtanh.f32 %v817_v14 }
 0x235   :  { %v1436_v22 = vpop.eup %1435 }
 0x236   :  { %v822_v23 = vmul.f32 %v1436_v22, %v820_v13 }
 0x237   :  { %v1438_v26 = vpop.eup %1437 }
 0x238   :  { %v1857_v30 = vadd.f32 %v824_v24, %v822_v23  ;;  %v823_v61 = vmul.f32 %v1438_v26, %v821_v19 }
 0x23a   :  { %v1860_v57 = vadd.f32 %v825_v25, %v823_v61 }
 0x23c   :  { %v835_v0 = vpack.c.bf16 %v1860_v57, %v1857_v30 }
 0x23e   :  { %869 = vmatmul.mubr.bf16.vlgmr.msra.gmra.mrb[8].mxu0 %v835_v0  ;;  %1272 = vmatmul.mubr.bf16.vlgmr.msra.gmra.mrb[16].mxu1 %v835_v0 }
 0x23f   :  { %963 = vmatpush1.bf16.msra.mxu0 %v1581_v27  ;;  %1276 = vmatpush3.bf16.msra.mxu1 %v1608_v32 }
 0x240   :  { %964 = vmatprep.subr.bf16.mxu0 %v1587_v28  ;;  %1277 = vmatprep.subr.bf16.mxu1 %v1464_v34 }
 0x241   :  { %994 = vmatprep.mubr.bf16.mxu0 %v1463_v1  ;;  %1291 = vmatprep.mubr.msk.bf16.mxu1 %vm1465_vm0, %v1464_v34 }
 0x243   :  { %965 = vmatpush1.bf16.msra.mxu0 %v1593_v29  ;;  %1278 = vmatpush3.bf16.msra.mxu1 %v1630_v37 }
 0x244   :  { %966 = vmatprep.subr.bf16.mxu0 %v1603_v31  ;;  %1279 = vmatprep.subr.bf16.mxu1 %v1464_v34 }
 0x247   :  { %967 = vmatpush1.bf16.msra.mxu0 %v1613_v33  ;;  %1280 = vmatpush3.bf16.msra.mxu1 %v1650_v40 }
 0x248   :  { %968 = vmatprep.subr.bf16.mxu0 %v1624_v36  ;;  %1281 = vmatprep.subr.bf16.mxu1 %v1464_v34 }
 0x24b   :  { %969 = vmatpush1.bf16.msra.mxu0 %v1637_v38  ;;  %1282 = vmatpush3.bf16.msra.mxu1 %v1672_v44 }
 0x24c   :  { %970 = vmatprep.subr.bf16.mxu0 %v1644_v39  ;;  %1283 = vmatprep.subr.bf16.mxu1 %v1464_v34 }
 0x24f   :  { %971 = vmatpush1.bf16.msra.mxu0 %v1660_v42  ;;  %1284 = vmatpush3.bf16.msra.mxu1 %v1694_v47 }
 0x250   :  { %972 = vmatprep.subr.bf16.mxu0 %v1666_v43  ;;  %1285 = vmatprep.subr.bf16.mxu1 %v1464_v34 }
 0x253   :  { %973 = vmatpush1.bf16.msra.mxu0 %v1681_v45  ;;  %1286 = vmatpush3.bf16.msra.mxu1 %v1713_v50 }
 0x254   :  { %974 = vmatprep.subr.bf16.mxu0 %v1688_v46  ;;  %1287 = vmatprep.subr.bf16.mxu1 %v1464_v34 }
 0x257   :  { %975 = vmatpush1.bf16.msra.mxu0 %v1701_v48  ;;  %1288 = vmatpush3.bf16.msra.mxu1 %v1728_v52 }
 0x258   :  { %976 = vmatprep.subr.bf16.mxu0 %v1707_v49  ;;  %1289 = vmatprep.subr.bf16.mxu1 %v1464_v34 }
 0x25b   :  { %977 = vmatpush1.bf16.msra.mxu0 %v1720_v51  ;;  %1290 = vmatpush3.bf16.msra.mxu1 %v1737_v53 }
 0x311   :  { %v870_v1 = vpop.f32.mrb[8].mxu0  ;;  %v913_v27 = vpop.f32.mrb[16].mxu1 }
 0x312   :  { %v1312_v28 = vadd.f32 %v1795_v18, %v870_v1  ;;  %v872_v29 = vpop.f32.mrb[9].mxu0  ;;  %v1273_v31 = vpop.f32.mrb[17].mxu1  ;;  %v914_v48 = vadd.f32 %v913_v27, %v1803_v5 }
 0x313   :  { %v874_v32 = vpop.f32.mrb[10].mxu0  ;;  %v916_v33 = vpop.f32.mrb[18].mxu1  ;;  %v1314_v40 = vadd.f32 %v1797_v20, %v872_v29 }
 0x314   :  { %v922_v36 = vmul.f32 0.5, %v1312_v28  ;;  %v1316_v37 = vadd.f32 %v1795_v18, %v874_v32  ;;  %v876_v38 = vpop.f32.mrb[11].mxu0  ;;  %v1274_v39 = vpop.f32.mrb[19].mxu1  ;;  %v917_v52 = vadd.f32 %v916_v33, %v1803_v5 }
 0x315   :  { %v1318_v42 = vadd.f32 %v1797_v20, %v876_v38  ;;  %v932_v43 = vmul.f32 0.5, %v1314_v40 }
 0x316   :  { %1439 = vtanh.f32 %v922_v36  ;;  %v923_v34 = vmul.f32 0.5, %v1316_v37 }
 0x317   :  { %v933_v44 = vmul.f32 0.5, %v1318_v42 }
 0x318   :  { %1441 = vtanh.f32 %v923_v34 }
 0x319   :  { %1443 = vtanh.f32 %v932_v43 }
 0x31a   :  { %1445 = vtanh.f32 %v933_v44 }
 0x320   :  { %v1440_v45 = vpop.eup %1439 }
 0x321   :  { %v926_v46 = vadd.f32 1.0, %v1440_v45 }
 0x322   :  { %v1442_v47 = vpop.eup %1441 }
 0x323   :  { %v928_v49 = vmul.f32 0.5, %v926_v46  ;;  %v927_v50 = vadd.f32 1.0, %v1442_v47  ;;  %v1444_v9 = vpop.eup %1443 }
 0x324   :  { %v1446_v35 = vpop.eup %1445  ;;  %v936_v54 = vadd.f32 1.0, %v1444_v9 }
 0x325   :  { %v940_v51 = vmul.f32 %v928_v49, %v914_v48  ;;  %v929_v53 = vmul.f32 0.5, %v927_v50  ;;  %v937_v55 = vadd.f32 1.0, %v1446_v35 }
 0x326   :  { %v938_v56 = vmul.f32 0.5, %v936_v54 }
 0x327   :  { %v942_v59 = vadd.f32 %v940_v51, %v1786_v6  ;;  %v941_v12 = vmul.f32 %v929_v53, %v917_v52  ;;  %v939_v58 = vmul.f32 0.5, %v937_v55 }
 0x328   :  { %v946_v62 = vsub.f32 1.0, %v938_v56  ;;  %v950_v60 = vmul.f32 %v938_v56, %v1857_v30 }
 0x329   :  { %1447 = vtanh.f32 %v942_v59  ;;  %v943_v41 = vadd.f32 %v941_v12, %v1790_v10  ;;  %v947_v7 = vsub.f32 1.0, %v939_v58  ;;  %v951_v6 = vmul.f32 %v939_v58, %v1860_v57 }
 0x32b   :  { %1449 = vtanh.f32 %v943_v41 }
 0x333   :  { %v1448_v63 = vpop.eup %1447 }
 0x334   :  { %v948_v3 = vmul.f32 %v1448_v63, %v946_v62 }
 0x335   :  { %v1450_v2 = vpop.eup %1449 }
 0x336   :  { %v952_v11 = vadd.f32 %v950_v60, %v948_v3  ;;  %v949_v14 = vmul.f32 %v1450_v2, %v947_v7 }
 0x338   :  { %v953_v15 = vadd.f32 %v951_v6, %v949_v14 }
 0x33a   :  { %v961_v16 = vpack.c.bf16 %v953_v15, %v952_v11 }
 0x33c   :  { %995 = vmatmul.mubr.bf16.vlgmr.msra.gmra.mrb[12].mxu0 %v961_v16  ;;  %1292 = vmatmul.mubr.bf16.vlgmr.msra.gmra.mrb[20].mxu1 %v961_v16 }
 0x40f   :  { %v996_v10 = vpop.f32.mrb[12].mxu0  ;;  %v1039_v17 = vpop.f32.mrb[20].mxu1 }
 0x410   :  { %v1320_v21 = vadd.f32 %v1795_v18, %v996_v10  ;;  %v998_v13 = vpop.f32.mrb[13].mxu0  ;;  %v1293_v22 = vpop.f32.mrb[21].mxu1  ;;  %v1040_v32 = vadd.f32 %v1039_v17, %v1803_v5 }
 0x411   :  { %v1000_v23 = vpop.f32.mrb[14].mxu0  ;;  %v1042_v24 = vpop.f32.mrb[22].mxu1  ;;  %v1322_v25 = vadd.f32 %v1797_v20, %v998_v13 }
 0x412   :  { %v1048_v19 = vmul.f32 0.5, %v1320_v21  ;;  %v1324_v26 = vadd.f32 %v1795_v18, %v1000_v23  ;;  %v1002_v30 = vpop.f32.mrb[15].mxu0  ;;  %v1294_v61 = vpop.f32.mrb[23].mxu1  ;;  %v1043_v37 = vadd.f32 %v1042_v24, %v1803_v5 }
 0x413   :  { %v1326_v0 = vadd.f32 %v1797_v20, %v1002_v30  ;;  %v1058_v1 = vmul.f32 0.5, %v1322_v25 }
 0x414   :  { %1451 = vtanh.f32 %v1048_v19  ;;  %v1049_v57 = vmul.f32 0.5, %v1324_v26 }
 0x415   :  { %v1059_v27 = vmul.f32 0.5, %v1326_v0 }
 0x416   :  { %1453 = vtanh.f32 %v1049_v57 }
 0x417   :  { %1455 = vtanh.f32 %v1058_v1 }
 0x418   :  { %1457 = vtanh.f32 %v1059_v27 }
 0x41e   :  { %v1452_v28 = vpop.eup %1451 }
 0x41f   :  { %v1052_v29 = vadd.f32 1.0, %v1452_v28 }
 0x420   :  { %v1454_v31 = vpop.eup %1453 }
 0x421   :  { %v1054_v33 = vmul.f32 0.5, %v1052_v29  ;;  %v1053_v18 = vadd.f32 1.0, %v1454_v31  ;;  %v1456_v39 = vpop.eup %1455 }
 0x422   :  { %v1458_v34 = vpop.eup %1457  ;;  %v1062_v43 = vadd.f32 1.0, %v1456_v39 }
 0x423   :  { %v1066_v36 = vmul.f32 %v1054_v33, %v1040_v32  ;;  %v1055_v38 = vmul.f32 0.5, %v1053_v18  ;;  %v1063_v44 = vadd.f32 1.0, %v1458_v34 }
 0x424   :  { %v1064_v45 = vmul.f32 0.5, %v1062_v43 }
 0x425   :  { %v1068_v40 = vadd.f32 %v1066_v36, %v1784_v4  ;;  %v1067_v20 = vmul.f32 %v1055_v38, %v1043_v37  ;;  %v1065_v46 = vmul.f32 0.5, %v1063_v44 }
 0x426   :  { %v1072_v47 = vsub.f32 1.0, %v1064_v45  ;;  %v1076_v50 = vmul.f32 %v1064_v45, %v952_v11 }
 0x427   :  { %1459 = vtanh.f32 %v1068_v40  ;;  %v1069_v42 = vadd.f32 %v1067_v20, %v1788_v8  ;;  %v1073_v51 = vsub.f32 1.0, %v1065_v46  ;;  %v1077_v9 = vmul.f32 %v1065_v46, %v953_v15 }
 0x429   :  { %1461 = vtanh.f32 %v1069_v42 }
 0x431   :  { %v1460_v48 = vpop.eup %1459 }
 0x432   :  { %v1074_v49 = vmul.f32 %v1460_v48, %v1072_v47 }
 0x433   :  { %v1462_v5 = vpop.eup %1461 }
 0x434   :  { %v1078_v52 = vadd.f32 %v1076_v50, %v1074_v49  ;;  %v1075_v53 = vmul.f32 %v1462_v5, %v1073_v51 }
 0x436   :  { %1085 = vst [vmem:[%s1926_s5] sm:$0xff] %v1078_v52  ;;  %v1079_v4 = vadd.f32 %v1077_v9, %v1075_v53 }
 0x438   :  { %1086 = vst [vmem:[%s1926_s5 + $0x8] sm:$0xff] %v1079_v4 }

// kernel: rnn_based_encoder_forward.2
= control target key start
LH: loop header
LB: loop body
LE: loop exit
PB: predicated region body
PF: predicated region fallthrough
CT: control target
= control target key end

     0   :  { %12 = vsyncpa [#allocation5], 0  ;;  %s2223_s21 = smov [#allocation4]   ;;  %s2605_s0 = inlined_call_operand.vmem [shape: bf16[4,16,128], index: 0, kind: input, shape index: {}]   ;;  %s2606_s1 = inlined_call_operand.vmem [shape: bf16[128,384], index: 1, kind: input, shape index: {}]   ;;  %s2607_s2 = inlined_call_operand.hbm [shape: bf16[128,384], index: 2, kind: input, shape index: {}]   ;;  %s2608_s3 = inlined_call_operand.vmem [shape: f32[1,384], index: 3, kind: input, shape index: {}]   ;;  %s2609_s4 = inlined_call_operand.vmem [shape: f32[1,384], index: 4, kind: input, shape index: {}]   ;;  %s2610_s5 = inlined_call_operand.vmem [shape: bf16[4,16,128], index: 5, kind: output, shape index: {0}]   ;;  %s2611_s6 = inlined_call_operand.vmem [shape: f32[16,128], index: 6, kind: output, shape index: {1}]  }
   0x1   :  { %s22_s22 = sshll.u32 %s2223_s21, 4  ;;  %s2199_s25 = scalar_lea.hbm %s2607_s2, 3072  ;;  %s23_s22 = int_to_ptr.vmem [resolvable:$true] %s22_s22 }
   0x2   :  { %p2200_p0 = scmp.ne.s32.totalorder %s2607_s2, %s2199_s25  ;;  %p2203_p1 = scmp.lt.u32.totalorder %s2199_s25, %s2607_s2 }
   0x4   :  { %p2205_p2 = pnand %p2203_p1, %p2200_p0 }
   0x6   :  { %2208 = shalt.err (!%p2205_p2)
}
   0x7   :  { %s2209_s30 = scalar_lea.vmem %s23_s22, 3072  ;;  %p2214_p4 = scmp.lt.s32.totalorder %s23_s22, %s23_s22 }
   0x8   :  { %p2210_p3 = scmp.ne.s32.totalorder %s23_s22, %s2209_s30  ;;  %p2215_p5 = scmp.lt.s32.totalorder %s2209_s30, %s2209_s30 }
   0xa   :  { %p2216_p6 = por %p2215_p5, %p2214_p4 }
   0xc   :  { %p2217_p7 = pnand %p2216_p6, %p2210_p3 }
   0xe   :  { %2220 = shalt.err (!%p2217_p7)
}
   0xf   :  { %s2224_s7 = smov 192   ;;  %s2225_s8 = smov 12  }
  0x10   :  { %28 = dma.hbm_to_vmem [thread:$0]  %s2607_s2, 3072, %s23_s22, [#allocation5], %s2224_s7, %s2224_s7, %s2225_s8  }
  0x11   :  { %2221 = dma.done.wait [#allocation5], 3072  }
  0x12   :  { %2222 = vsyncadd [#allocation5], 4294964224  ;;  %v2226_v0 = vmov 0   ;;  %v2059_v1 = vld [vmem:[%s2606_s1 + $0x4] ss:$12 sps:$4 sm:$0xff]   ;;  %v2097_v30 = vld [vmem:[%s2605_s0 + $0x8] sm:$0xff]   ;;  %v85_v63 = vlaneseq }
  0x13   :  { %284 = vmatprep.mubr.bf16.mxu0 %v2226_v0  ;;  %v2061_v2 = vld [vmem:[%s2606_s1] ss:$12 sps:$4 sm:$0xff]   ;;  %252 = vmatprep.subr.bf16.mxu0 %v2059_v1  ;;  %v2062_v3 = vld [vmem:[%s2606_s1 + $0x1c] ss:$12 sps:$4 sm:$0xff]   ;;  %v2064_v4 = vld [vmem:[%s2606_s1 + $0x18] ss:$12 sps:$4 sm:$0xff]  }
  0x14   :  { %253 = vmatpush1.bf16.msra.mxu0 %v2061_v2  ;;  %v2065_v5 = vld [vmem:[%s2606_s1 + $0x34] ss:$12 sps:$4 sm:$0xff]   ;;  %v2067_v7 = vld [vmem:[%s2606_s1 + $0x30] ss:$12 sps:$4 sm:$0xff]   ;;  %v2068_v8 = vld [vmem:[%s2606_s1 + $0x4c] ss:$12 sps:$4 sm:$0xff]  }
  0x15   :  { %254 = vmatprep.subr.bf16.mxu0 %v2062_v3  ;;  %v2071_v6 = vld [vmem:[%s2606_s1 + $0x8] ss:$12 sps:$4 sm:$0xff]   ;;  %v2075_v9 = vld [vmem:[%s2606_s1 + $0x20] ss:$12 sps:$4 sm:$0xff]   ;;  %v2079_v10 = vld [vmem:[%s2606_s1 + $0x38] ss:$12 sps:$4 sm:$0xff]  }
  0x16   :  { %1900 = vmatprep.subr.bf16.mxu1 %v2071_v6  ;;  %v2070_v11 = vld [vmem:[%s2606_s1 + $0x48] ss:$12 sps:$4 sm:$0xff]   ;;  %v2072_v12 = vld [vmem:[%s2606_s1 + $0x64] ss:$12 sps:$4 sm:$0xff]   ;;  %v2074_v13 = vld [vmem:[%s2606_s1 + $0x60] ss:$12 sps:$4 sm:$0xff]  }
  0x17   :  { %1901 = vmatpush3.bf16.msra.mxu1 %v2071_v6  ;;  %v2083_v14 = vld [vmem:[%s2606_s1 + $0x50] ss:$12 sps:$4 sm:$0xff]   ;;  %v2088_v16 = vld [vmem:[%s2605_s0] sm:$0xff]   ;;  %v2087_v17 = vld [vmem:[%s2606_s1 + $0x68] ss:$12 sps:$4 sm:$0xff]   ;;  %v2227_v34 = vmov 0.0  }
  0x18   :  { %255 = vmatpush1.bf16.msra.mxu0 %v2064_v4  ;;  %1902 = vmatprep.subr.bf16.mxu1 %v2075_v9  ;;  %v2076_v15 = vld [vmem:[%s2606_s1 + $0x7c] ss:$12 sps:$4 sm:$0xff]   ;;  %v2078_v18 = vld [vmem:[%s2606_s1 + $0x78] ss:$12 sps:$4 sm:$0xff]   ;;  %v2080_v19 = vld [vmem:[%s2606_s1 + $0x94] ss:$12 sps:$4 sm:$0xff]  }
  0x19   :  { %256 = vmatprep.subr.bf16.mxu0 %v2065_v5  ;;  %1916 = vmatprep.mubr.bf16.mxu1 %v2088_v16  ;;  %v2092_v20 = vld [vmem:[%s2606_s1 + $0x80] ss:$12 sps:$4 sm:$0xff]   ;;  %v2082_v21 = vld [vmem:[%s2606_s1 + $0x90] ss:$12 sps:$4 sm:$0xff]   ;;  %v2096_v23 = vld [vmem:[%s2606_s1 + $0x98] ss:$12 sps:$4 sm:$0xff]  }
  0x1a   :  { %v2084_v22 = vld [vmem:[%s2606_s1 + $0xac] ss:$12 sps:$4 sm:$0xff]   ;;  %v2086_v24 = vld [vmem:[%s2606_s1 + $0xa8] ss:$12 sps:$4 sm:$0xff]   ;;  %v2350_v25 = vld [vmem:[#allocation4 + $0x4] ss:$12 sps:$4 sm:$0xff]  }
  0x1b   :  { %1903 = vmatpush3.bf16.msra.mxu1 %v2075_v9  ;;  %v2101_v26 = vld [vmem:[%s2606_s1 + $0xb0] ss:$12 sps:$4 sm:$0xff]   ;;  %v2355_v27 = vld [vmem:[#allocation4] ss:$12 sps:$4 sm:$0xff]   ;;  %v2361_v29 = vld [vmem:[#allocation4 + $0x18] ss:$12 sps:$4 sm:$0xff]  }
  0x1c   :  { %257 = vmatpush1.bf16.msra.mxu0 %v2067_v7  ;;  %1904 = vmatprep.subr.bf16.mxu1 %v2079_v10  ;;  %v2358_v28 = vld [vmem:[#allocation4 + $0x1c] ss:$12 sps:$4 sm:$0xff]   ;;  %v2368_v31 = vld [vmem:[#allocation4 + $0x34] ss:$12 sps:$4 sm:$0xff]   ;;  %v2378_v36 = vld [vmem:[#allocation4 + $0x4c] ss:$12 sps:$4 sm:$0xff]  }
  0x1d   :  { %258 = vmatprep.subr.bf16.mxu0 %v2068_v8  ;;  %v2109_v32 = vld [vmem:[#allocation4 + $0x8] ss:$12 sps:$4 sm:$0xff]   ;;  %v2370_v33 = vld [vmem:[#allocation4 + $0x30] ss:$12 sps:$4 sm:$0xff]   ;;  %v2113_v38 = vld [vmem:[#allocation4 + $0x20] ss:$12 sps:$4 sm:$0xff]  }
  0x1e   :  { %v2105_v35 = vld [vmem:[%s2605_s0 + $0x10] sm:$0xff]   ;;  %v2118_v40 = vld [vmem:[#allocation4 + $0x38] ss:$12 sps:$4 sm:$0xff]   ;;  %v2391_v42 = vld [vmem:[#allocation4 + $0x60] ss:$12 sps:$4 sm:$0xff]   ;;  %vm2228_vm0 = vmmov 0  }
  0x1f   :  { %1905 = vmatpush3.bf16.msra.mxu1 %v2079_v10  ;;  %v2380_v37 = vld [vmem:[#allocation4 + $0x48] ss:$12 sps:$4 sm:$0xff]   ;;  %v2382_v39 = vld [vmem:[#allocation4 + $0x64] ss:$12 sps:$4 sm:$0xff]   ;;  %v2114_v41 = vld [vmem:[%s2605_s0 + $0x18] sm:$0xff]   ;;  %v2229_v54 = vmov 0.0|0.0  }
  0x20   :  { %259 = vmatpush1.bf16.msra.mxu0 %v2070_v11  ;;  %1906 = vmatprep.subr.bf16.mxu1 %v2083_v14  ;;  %v2393_v43 = vld [vmem:[#allocation4 + $0x7c] ss:$12 sps:$4 sm:$0xff]   ;;  %v2398_v45 = vld [vmem:[#allocation4 + $0x78] ss:$12 sps:$4 sm:$0xff]   ;;  %v2402_v46 = vld [vmem:[#allocation4 + $0x94] ss:$12 sps:$4 sm:$0xff]  }
  0x21   :  { %260 = vmatprep.subr.bf16.mxu0 %v2072_v12  ;;  %v2122_v44 = vld [vmem:[#allocation4 + $0x50] ss:$12 sps:$4 sm:$0xff]   ;;  %v2123_v47 = vld [vmem:[#allocation4 + $0x68] ss:$12 sps:$4 sm:$0xff]   ;;  %v2410_v49 = vld [vmem:[#allocation4 + $0xac] ss:$12 sps:$4 sm:$0xff]  }
  0x22   :  { %v2408_v48 = vld [vmem:[#allocation4 + $0x90] ss:$12 sps:$4 sm:$0xff]   ;;  %v2124_v50 = vld [vmem:[#allocation4 + $0x80] ss:$12 sps:$4 sm:$0xff]   ;;  %v2417_v51 = vld [vmem:[#allocation4 + $0xa8] ss:$12 sps:$4 sm:$0xff]  }
  0x23   :  { %1907 = vmatpush3.bf16.msra.mxu1 %v2083_v14  ;;  %v2125_v52 = vld [vmem:[#allocation4 + $0x98] ss:$12 sps:$4 sm:$0xff]   ;;  %v2126_v53 = vld [vmem:[#allocation4 + $0xb0] ss:$12 sps:$4 sm:$0xff]   ;;  %v2127_v55 = vld [vmem:[#allocation4 + $0x8] ss:$12 sps:$4 sm:$0xff]  }
  0x24   :  { %261 = vmatpush1.bf16.msra.mxu0 %v2074_v13  ;;  %1908 = vmatprep.subr.bf16.mxu1 %v2087_v17  ;;  %v2128_v56 = vld [vmem:[#allocation4 + $0x20] ss:$12 sps:$4 sm:$0xff]   ;;  %v2129_v57 = vld [vmem:[#allocation4 + $0x38] ss:$12 sps:$4 sm:$0xff]   ;;  %v2130_v58 = vld [vmem:[#allocation4 + $0x50] ss:$12 sps:$4 sm:$0xff]  }
  0x25   :  { %262 = vmatprep.subr.bf16.mxu0 %v2076_v15  ;;  %v2131_v59 = vld [vmem:[#allocation4 + $0x68] ss:$12 sps:$4 sm:$0xff]   ;;  %v2132_v60 = vld [vmem:[#allocation4 + $0x80] ss:$12 sps:$4 sm:$0xff]   ;;  %v2133_v61 = vld [vmem:[#allocation4 + $0x98] ss:$12 sps:$4 sm:$0xff]  }
  0x26   :  { %v2134_v62 = vld [vmem:[#allocation4 + $0xb0] ss:$12 sps:$4 sm:$0xff]   ;;  %v86_v1 = vshrl.u32 %v85_v63, 7  ;;  %v83_v3 = vld [vmem:[%s2608_s3] sm:$0x7] }
  0x27   :  { %1909 = vmatpush3.bf16.msra.mxu1 %v2087_v17 }
  0x28   :  { %263 = vmatpush1.bf16.msra.mxu0 %v2078_v18  ;;  %1910 = vmatprep.subr.bf16.mxu1 %v2092_v20  ;;  %v2453_v2 = vsub.s32 2, %v86_v1 }
  0x29   :  { %264 = vmatprep.subr.bf16.mxu0 %v2080_v19  ;;  %v2471_v19 = vsub.s32 0, %v86_v1 }
  0x2a   :  { %v96_v4 = vrot.slane %v83_v3, %v2453_v2 }
  0x2b   :  { %1911 = vmatpush3.bf16.msra.mxu1 %v2092_v20  ;;  %v455_v20 = vld [vmem:[%s2609_s4] sm:$0x7] }
  0x2c   :  { %265 = vmatpush1.bf16.msra.mxu0 %v2082_v21  ;;  %1912 = vmatprep.subr.bf16.mxu1 %v2096_v23  ;;  %v2476_v21 = vsub.s32 1, %v86_v1 }
  0x2d   :  { %266 = vmatprep.subr.bf16.mxu0 %v2084_v22  ;;  %v2479_v22 = vrot.slane %v83_v3, %v2471_v19 }
  0x2f   :  { %1913 = vmatpush3.bf16.msra.mxu1 %v2096_v23  ;;  %v460_v23 = vrot.slane %v455_v20, %v2471_v19 }
  0x30   :  { %267 = vmatpush1.bf16.msra.mxu0 %v2086_v24  ;;  %1914 = vmatprep.subr.bf16.mxu1 %v2101_v26  ;;  %v2483_v24 = vrot.slane %v83_v3, %v2476_v21 }
  0x31   :  { %600 = vmatprep.subr.bf16.mxu0 %v2350_v25 }
  0x33   :  { %285 = vmatmul.mubr.bf16.vlgmr.msra.gmra.mrb[0].mxu0 %v2088_v16  ;;  %1915 = vmatpush3.bf16.msra.mxu1 %v2101_v26  ;;  %v464_v26 = vrot.slane %v455_v20, %v2476_v21 }
  0x34   :  { %601 = vmatpush1.bf16.msra.mxu0 %v2355_v27  ;;  %294 = vmatprep.mubr.bf16.mxu0 %v2226_v0 }
  0x35   :  { %602 = vmatprep.subr.bf16.mxu0 %v2358_v28  ;;  %1924 = vmatprep.subr.bf16.mxu1 %v2227_v34 }
  0x36   :  { %1917 = vmatmul.mubr.bf16.vlgmr.msra.gmra.mrb[0].mxu1 %v2097_v30 }
  0x37   :  { %1925 = vmatpush3.bf16.msra.mxu1 %v2109_v32  ;;  %1920 = vmatprep.mubr.bf16.mxu1 %v2105_v35 }
  0x38   :  { %603 = vmatpush1.bf16.msra.mxu0 %v2361_v29  ;;  %1926 = vmatprep.subr.bf16.mxu1 %v2227_v34 }
  0x39   :  { %604 = vmatprep.subr.bf16.mxu0 %v2368_v31 }
  0x3b   :  { %295 = vmatmul.mubr.bf16.gmra.mrb[4].mxu0 %v2097_v30  ;;  %1927 = vmatpush3.bf16.msra.mxu1 %v2113_v38  ;;  %v2004_v30 = vadd.f32 %v460_v23, %v2479_v22 }
  0x3c   :  { %605 = vmatpush1.bf16.msra.mxu0 %v2370_v33  ;;  %304 = vmatprep.mubr.bf16.mxu0 %v2226_v0 }
  0x3d   :  { %606 = vmatprep.subr.bf16.mxu0 %v2378_v36  ;;  %1928 = vmatprep.subr.bf16.mxu1 %v2227_v34 }
  0x3e   :  { %1921 = vmatmul.mubr.bf16.gmra.mrb[4].mxu1 %v2114_v41 }
  0x3f   :  { %1929 = vmatpush3.bf16.msra.mxu1 %v2118_v40  ;;  %1940 = vmatprep.mubr.msk.bf16.mxu1 %vm2228_vm0, %v2227_v34 }
  0x40   :  { %607 = vmatpush1.bf16.msra.mxu0 %v2380_v37  ;;  %1930 = vmatprep.subr.bf16.mxu1 %v2227_v34 }
  0x41   :  { %608 = vmatprep.subr.bf16.mxu0 %v2382_v39 }
  0x43   :  { %305 = vmatmul.mubr.bf16.gmra.mrb[8].mxu0 %v2105_v35  ;;  %1931 = vmatpush3.bf16.msra.mxu1 %v2122_v44  ;;  %v2006_v35 = vadd.f32 %v464_v26, %v2483_v24 }
  0x44   :  { %609 = vmatpush1.bf16.msra.mxu0 %v2391_v42  ;;  %314 = vmatprep.mubr.bf16.mxu0 %v2226_v0 }
  0x45   :  { %610 = vmatprep.subr.bf16.mxu0 %v2393_v43  ;;  %1932 = vmatprep.subr.bf16.mxu1 %v2227_v34 }
  0x47   :  { %1933 = vmatpush3.bf16.msra.mxu1 %v2123_v47 }
  0x48   :  { %611 = vmatpush1.bf16.msra.mxu0 %v2398_v45  ;;  %1934 = vmatprep.subr.bf16.mxu1 %v2227_v34 }
  0x49   :  { %612 = vmatprep.subr.bf16.mxu0 %v2402_v46 }
  0x4b   :  { %315 = vmatmul.mubr.bf16.gmra.mrb[12].mxu0 %v2114_v41  ;;  %1935 = vmatpush3.bf16.msra.mxu1 %v2124_v50 }
  0x4c   :  { %613 = vmatpush1.bf16.msra.mxu0 %v2408_v48  ;;  %632 = vmatprep.mubr.bf16.mxu0 %v2226_v0 }
  0x4d   :  { %614 = vmatprep.subr.bf16.mxu0 %v2410_v49  ;;  %1936 = vmatprep.subr.bf16.mxu1 %v2227_v34 }
  0x4f   :  { %1937 = vmatpush3.bf16.msra.mxu1 %v2125_v52 }
  0x50   :  { %615 = vmatpush1.bf16.msra.mxu0 %v2417_v51  ;;  %1938 = vmatprep.subr.bf16.mxu1 %v2227_v34 }
  0x51   :  { %912 = vmatprep.subr.bf16.mxu0 %v2350_v25 }
  0x53   :  { %633 = vmatmul.mubr.bf16.vlgmr.msra.gmra.mrb[0].mxu0 %v2229_v54  ;;  %1939 = vmatpush3.bf16.msra.mxu1 %v2126_v53 }
  0x54   :  { %913 = vmatpush1.bf16.msra.mxu0 %v2355_v27  ;;  %944 = vmatprep.mubr.bf16.mxu0 %v2226_v0 }
  0x55   :  { %914 = vmatprep.subr.bf16.mxu0 %v2358_v28  ;;  %1944 = vmatprep.subr.bf16.mxu1 %v2227_v34 }
  0x56   :  { %1941 = vmatmul.mubr.bf16.vlgmr.msra.gmra.mrb[8].mxu1 %v2229_v54 }
  0x57   :  { %1960 = vmatprep.mubr.msk.bf16.mxu1 %vm2228_vm0, %v2227_v34  ;;  %1945 = vmatpush3.bf16.msra.mxu1 %v2127_v55 }
  0x58   :  { %915 = vmatpush1.bf16.msra.mxu0 %v2361_v29  ;;  %1946 = vmatprep.subr.bf16.mxu1 %v2227_v34 }
  0x59   :  { %916 = vmatprep.subr.bf16.mxu0 %v2368_v31 }
  0x5b   :  { %1947 = vmatpush3.bf16.msra.mxu1 %v2128_v56 }
  0x5c   :  { %917 = vmatpush1.bf16.msra.mxu0 %v2370_v33  ;;  %1948 = vmatprep.subr.bf16.mxu1 %v2227_v34 }
  0x5d   :  { %918 = vmatprep.subr.bf16.mxu0 %v2378_v36 }
  0x5f   :  { %1949 = vmatpush3.bf16.msra.mxu1 %v2129_v57 }
  0x60   :  { %919 = vmatpush1.bf16.msra.mxu0 %v2380_v37  ;;  %1950 = vmatprep.subr.bf16.mxu1 %v2227_v34 }
  0x61   :  { %920 = vmatprep.subr.bf16.mxu0 %v2382_v39 }
  0x63   :  { %1951 = vmatpush3.bf16.msra.mxu1 %v2130_v58 }
  0x64   :  { %921 = vmatpush1.bf16.msra.mxu0 %v2391_v42  ;;  %1952 = vmatprep.subr.bf16.mxu1 %v2227_v34 }
  0x65   :  { %922 = vmatprep.subr.bf16.mxu0 %v2393_v43 }
  0x67   :  { %1953 = vmatpush3.bf16.msra.mxu1 %v2131_v59 }
  0x68   :  { %923 = vmatpush1.bf16.msra.mxu0 %v2398_v45  ;;  %1954 = vmatprep.subr.bf16.mxu1 %v2227_v34 }
  0x69   :  { %924 = vmatprep.subr.bf16.mxu0 %v2402_v46 }
  0x6b   :  { %1955 = vmatpush3.bf16.msra.mxu1 %v2132_v60 }
  0x6c   :  { %925 = vmatpush1.bf16.msra.mxu0 %v2408_v48  ;;  %1956 = vmatprep.subr.bf16.mxu1 %v2227_v34 }
  0x6d   :  { %926 = vmatprep.subr.bf16.mxu0 %v2410_v49 }
  0x6f   :  { %1957 = vmatpush3.bf16.msra.mxu1 %v2133_v61  ;;  %v468_v61 = vrot.slane %v455_v20, %v2453_v2 }
  0x70   :  { %927 = vmatpush1.bf16.msra.mxu0 %v2417_v51  ;;  %1958 = vmatprep.subr.bf16.mxu1 %v2227_v34 }
  0x71   :  { %1225 = vmatprep.subr.bf16.mxu0 %v2350_v25 }
  0x73   :  { %1959 = vmatpush3.bf16.msra.mxu1 %v2134_v62 }
  0x74   :  { %1964 = vmatprep.subr.bf16.mxu1 %v2227_v34 }
 0x109   :  { %v1918_v5 = vpop.f32.mrb[0].mxu1 }
 0x10a   :  { %v2459_v6 = vadd.f32 %v1918_v5, %v96_v4  ;;  %v359_v7 = vpop.f32.mrb[1].mxu1 }
 0x10b   :  { %v1919_v8 = vpop.f32.mrb[2].mxu1 }
 0x10c   :  { %v2461_v9 = vadd.f32 %v1919_v8, %v96_v4  ;;  %v362_v10 = vpop.f32.mrb[3].mxu1 }
 0x10d   :  { %v363_v26 = vadd.f32 %v362_v10, %v96_v4 }
 0x111   :  { %v1922_v11 = vpop.f32.mrb[4].mxu1 }
 0x112   :  { %v2463_v12 = vadd.f32 %v1922_v11, %v96_v4  ;;  %v375_v13 = vpop.f32.mrb[5].mxu1  ;;  %v360_v11 = vadd.f32 %v359_v7, %v96_v4 }
 0x113   :  { %v2465_v14 = vadd.f32 %v375_v13, %v96_v4  ;;  %v1923_v15 = vpop.f32.mrb[6].mxu1 }
 0x114   :  { %v2467_v16 = vadd.f32 %v1923_v15, %v96_v4  ;;  %v378_v17 = vpop.f32.mrb[7].mxu1 }
 0x115   :  { %v2469_v18 = vadd.f32 %v378_v17, %v96_v4 }
 0x126   :  { %v634_v32 = vpop.f32.mrb[0].mxu0 }
 0x127   :  { %v2005_v38 = vadd.f32 %v2004_v30, %v634_v32  ;;  %v636_v40 = vpop.f32.mrb[1].mxu0 }
 0x128   :  { %v638_v41 = vpop.f32.mrb[2].mxu0  ;;  %v2007_v52 = vadd.f32 %v2006_v35, %v636_v40 }
 0x129   :  { %v686_v44 = vmul.f32 0.5, %v2005_v38  ;;  %v2009_v47 = vadd.f32 %v2004_v30, %v638_v41  ;;  %v640_v50 = vpop.f32.mrb[3].mxu0  ;;  %v677_v55 = vpop.f32.mrb[8].mxu1 }
 0x12a   :  { %v2011_v54 = vadd.f32 %v2006_v35, %v640_v50  ;;  %v1942_v56 = vpop.f32.mrb[9].mxu1  ;;  %v696_v57 = vmul.f32 0.5, %v2007_v52  ;;  %v678_v1 = vadd.f32 %v677_v55, %v468_v61 }
 0x12b   :  { %2151 = vtanh.f32 %v686_v44  ;;  %v687_v53 = vmul.f32 0.5, %v2009_v47  ;;  %v680_v58 = vpop.f32.mrb[10].mxu1 }
 0x12c   :  { %v1943_v59 = vpop.f32.mrb[11].mxu1  ;;  %v697_v60 = vmul.f32 0.5, %v2011_v54  ;;  %v681_v15 = vadd.f32 %v680_v58, %v468_v61  ;;  %v2135_v58 = vld [vmem:[#allocation4 + $0x8] ss:$12 sps:$4 sm:$0xff]   ;;  %v2138_v61 = vld [vmem:[#allocation4 + $0x50] ss:$12 sps:$4 sm:$0xff]  }
 0x12d   :  { %2153 = vtanh.f32 %v687_v53  ;;  %v2136_v59 = vld [vmem:[#allocation4 + $0x20] ss:$12 sps:$4 sm:$0xff]  }
 0x12e   :  { %2155 = vtanh.f32 %v696_v57 }
 0x12f   :  { %2157 = vtanh.f32 %v697_v60  ;;  %v2137_v60 = vld [vmem:[#allocation4 + $0x38] ss:$12 sps:$4 sm:$0xff]  }
 0x135   :  { %v2152_v62 = vpop.eup %2151 }
 0x136   :  { %v690_v63 = vadd.f32 1.0, %v2152_v62  ;;  %v2139_v62 = vld [vmem:[#allocation4 + $0x68] ss:$12 sps:$4 sm:$0xff]  }
 0x137   :  { %v2154_v3 = vpop.eup %2153 }
 0x138   :  { %v691_v5 = vadd.f32 1.0, %v2154_v3  ;;  %v692_v8 = vmul.f32 0.5, %v690_v63  ;;  %v2156_v23 = vpop.eup %2155  ;;  %v2141_v63 = vld [vmem:[#allocation4 + $0x98] ss:$12 sps:$4 sm:$0xff]   ;;  %v767_v3 = vld [vmem:[%s2609_s4] sm:$0x7] }
 0x139   :  { %v2158_v35 = vpop.eup %2157  ;;  %v700_v40 = vadd.f32 1.0, %v2156_v23 }
 0x13a   :  { %v704_v13 = vmul.f32 %v692_v8, %v678_v1  ;;  %v693_v17 = vmul.f32 0.5, %v691_v5  ;;  %v701_v20 = vadd.f32 1.0, %v2158_v35  ;;  %v2142_v1 = vld [vmem:[#allocation4 + $0xb0] ss:$12 sps:$4 sm:$0xff]   ;;  %v772_v5 = vrot.slane %v767_v3, %v2471_v19 }
 0x13b   :  { %v702_v41 = vmul.f32 0.5, %v700_v40  ;;  %v776_v8 = vrot.slane %v767_v3, %v2476_v21 }
 0x13c   :  { %v706_v30 = vadd.f32 %v704_v13, %v360_v11  ;;  %v705_v32 = vmul.f32 %v693_v17, %v681_v15  ;;  %v703_v44 = vmul.f32 0.5, %v701_v20  ;;  %v2012_v11 = vadd.f32 %v772_v5, %v2479_v22 }
 0x13d   :  { %v710_v47 = vsub.f32 1.0, %v702_v41  ;;  %v714_v52 = vmul.f32 0.0, %v702_v41  ;;  %v2014_v17 = vadd.f32 %v776_v8, %v2483_v24 }
 0x13e   :  { %2159 = vtanh.f32 %v706_v30  ;;  %v707_v38 = vadd.f32 %v705_v32, %v363_v26  ;;  %v711_v53 = vsub.f32 1.0, %v703_v44  ;;  %v715_v55 = vmul.f32 0.0, %v703_v44 }
 0x140   :  { %2161 = vtanh.f32 %v707_v38 }
 0x148   :  { %v2160_v50 = vpop.eup %2159 }
 0x149   :  { %v712_v7 = vmul.f32 %v2160_v50, %v710_v47 }
 0x14a   :  { %v2162_v54 = vpop.eup %2161 }
 0x14b   :  { %v713_v56 = vmul.f32 %v2162_v54, %v711_v53  ;;  %v2489_v57 = vadd.f32 %v714_v52, %v712_v7  ;;  %v780_v7 = vrot.slane %v767_v3, %v2453_v2 }
 0x14d   :  { %v2491_v4 = vadd.f32 %v715_v55, %v713_v56 }
 0x14f   :  { %v718_v10 = vpack.c.bf16 %v2491_v4, %v2489_v57 }
 0x151   :  { %1833 = vst [vmem:[%s2610_s5] sm:$0xff] %v718_v10   ;;  %945 = vmatmul.mubr.bf16.vlgmr.msra.gmra.mrb[4].mxu0 %v718_v10  ;;  %1961 = vmatmul.mubr.bf16.vlgmr.msra.gmra.mrb[12].mxu1 %v718_v10 }
 0x152   :  { %1226 = vmatpush1.bf16.msra.mxu0 %v2355_v27  ;;  %1257 = vmatprep.mubr.bf16.mxu0 %v2226_v0 }
 0x153   :  { %1227 = vmatprep.subr.bf16.mxu0 %v2358_v28  ;;  %1980 = vmatprep.mubr.msk.bf16.mxu1 %vm2228_vm0, %v2227_v34 }
 0x154   :  { %1965 = vmatpush3.bf16.msra.mxu1 %v2135_v58 }
 0x155   :  { %1966 = vmatprep.subr.bf16.mxu1 %v2227_v34 }
 0x156   :  { %1228 = vmatpush1.bf16.msra.mxu0 %v2361_v29 }
 0x157   :  { %1229 = vmatprep.subr.bf16.mxu0 %v2368_v31 }
 0x158   :  { %1967 = vmatpush3.bf16.msra.mxu1 %v2136_v59 }
 0x159   :  { %1968 = vmatprep.subr.bf16.mxu1 %v2227_v34 }
 0x15a   :  { %1230 = vmatpush1.bf16.msra.mxu0 %v2370_v33 }
 0x15b   :  { %1231 = vmatprep.subr.bf16.mxu0 %v2378_v36 }
 0x15c   :  { %1969 = vmatpush3.bf16.msra.mxu1 %v2137_v60 }
 0x15d   :  { %1970 = vmatprep.subr.bf16.mxu1 %v2227_v34 }
 0x15e   :  { %1232 = vmatpush1.bf16.msra.mxu0 %v2380_v37 }
 0x15f   :  { %1233 = vmatprep.subr.bf16.mxu0 %v2382_v39 }
 0x160   :  { %1971 = vmatpush3.bf16.msra.mxu1 %v2138_v61 }
 0x161   :  { %1972 = vmatprep.subr.bf16.mxu1 %v2227_v34 }
 0x162   :  { %1234 = vmatpush1.bf16.msra.mxu0 %v2391_v42 }
 0x163   :  { %1235 = vmatprep.subr.bf16.mxu0 %v2393_v43 }
 0x164   :  { %1973 = vmatpush3.bf16.msra.mxu1 %v2139_v62 }
 0x165   :  { %1974 = vmatprep.subr.bf16.mxu1 %v2227_v34 }
 0x166   :  { %1236 = vmatpush1.bf16.msra.mxu0 %v2398_v45 }
 0x167   :  { %1237 = vmatprep.subr.bf16.mxu0 %v2402_v46 }
 0x16a   :  { %1238 = vmatpush1.bf16.msra.mxu0 %v2408_v48 }
 0x16b   :  { %1239 = vmatprep.subr.bf16.mxu0 %v2410_v49 }
 0x16e   :  { %1240 = vmatpush1.bf16.msra.mxu0 %v2417_v51 }
 0x16f   :  { %1538 = vmatprep.subr.bf16.mxu0 %v2350_v25  ;;  %v2140_v25 = vld [vmem:[#allocation4 + $0x80] ss:$12 sps:$4 sm:$0xff]  }
 0x170   :  { %1975 = vmatpush3.bf16.msra.mxu1 %v2140_v25 }
 0x171   :  { %1976 = vmatprep.subr.bf16.mxu1 %v2227_v34 }
 0x174   :  { %1977 = vmatpush3.bf16.msra.mxu1 %v2141_v63 }
 0x175   :  { %1978 = vmatprep.subr.bf16.mxu1 %v2227_v34 }
 0x178   :  { %1979 = vmatpush3.bf16.msra.mxu1 %v2142_v1 }
 0x179   :  { %1984 = vmatprep.subr.bf16.mxu1 %v2227_v34 }
 0x224   :  { %v946_v13 = vpop.f32.mrb[4].mxu0  ;;  %v989_v15 = vpop.f32.mrb[12].mxu1 }
 0x225   :  { %v2013_v23 = vadd.f32 %v2012_v11, %v946_v13  ;;  %v948_v26 = vpop.f32.mrb[5].mxu0  ;;  %v1962_v30 = vpop.f32.mrb[13].mxu1  ;;  %v990_v10 = vadd.f32 %v989_v15, %v780_v7 }
 0x226   :  { %v950_v32 = vpop.f32.mrb[6].mxu0  ;;  %v992_v35 = vpop.f32.mrb[14].mxu1  ;;  %v2015_v44 = vadd.f32 %v2014_v17, %v948_v26 }
 0x227   :  { %v998_v38 = vmul.f32 0.5, %v2013_v23  ;;  %v2017_v40 = vadd.f32 %v2012_v11, %v950_v32  ;;  %v952_v20 = vpop.f32.mrb[7].mxu0  ;;  %v1963_v41 = vpop.f32.mrb[15].mxu1  ;;  %v993_v61 = vadd.f32 %v992_v35, %v780_v7 }
 0x228   :  { %v2019_v50 = vadd.f32 %v2014_v17, %v952_v20  ;;  %v1008_v52 = vmul.f32 0.5, %v2015_v44 }
 0x229   :  { %2163 = vtanh.f32 %v998_v38  ;;  %v999_v47 = vmul.f32 0.5, %v2017_v40 }
 0x22a   :  { %v1009_v53 = vmul.f32 0.5, %v2019_v50 }
 0x22b   :  { %2165 = vtanh.f32 %v999_v47 }
 0x22c   :  { %2167 = vtanh.f32 %v1008_v52 }
 0x22d   :  { %2169 = vtanh.f32 %v1009_v53 }
 0x233   :  { %v2164_v54 = vpop.eup %2163 }
 0x234   :  { %v1002_v55 = vadd.f32 1.0, %v2164_v54 }
 0x235   :  { %v2166_v56 = vpop.eup %2165 }
 0x236   :  { %v1004_v58 = vmul.f32 0.5, %v1002_v55  ;;  %v1003_v59 = vadd.f32 1.0, %v2166_v56  ;;  %v2168_v25 = vpop.eup %2167 }
 0x237   :  { %v2170_v5 = vpop.eup %2169  ;;  %v1012_v11 = vadd.f32 1.0, %v2168_v25 }
 0x238   :  { %v1016_v60 = vmul.f32 %v1004_v58, %v990_v10  ;;  %v1005_v62 = vmul.f32 0.5, %v1003_v59  ;;  %v1013_v3 = vadd.f32 1.0, %v2170_v5 }
 0x239   :  { %v1014_v13 = vmul.f32 0.5, %v1012_v11 }
 0x23a   :  { %v1018_v63 = vadd.f32 %v1016_v60, %v2459_v6  ;;  %v1017_v1 = vmul.f32 %v1005_v62, %v993_v61  ;;  %v1015_v17 = vmul.f32 0.5, %v1013_v3 }
 0x23b   :  { %v1022_v23 = vsub.f32 1.0, %v1014_v13  ;;  %v1026_v30 = vmul.f32 %v1014_v13, %v2489_v57 }
 0x23c   :  { %2171 = vtanh.f32 %v1018_v63  ;;  %v1019_v8 = vadd.f32 %v1017_v1, %v2461_v9  ;;  %v1023_v32 = vsub.f32 1.0, %v1015_v17  ;;  %v1027_v40 = vmul.f32 %v1015_v17, %v2491_v4 }
 0x23e   :  { %2173 = vtanh.f32 %v1019_v8 }
 0x246   :  { %v2172_v15 = vpop.eup %2171 }
 0x247   :  { %v1024_v26 = vmul.f32 %v2172_v15, %v1022_v23 }
 0x248   :  { %v2174_v35 = vpop.eup %2173 }
 0x249   :  { %v2536_v38 = vadd.f32 %v1026_v30, %v1024_v26  ;;  %v1025_v6 = vmul.f32 %v2174_v35, %v1023_v32 }
 0x24b   :  { %v2539_v20 = vadd.f32 %v1027_v40, %v1025_v6 }
 0x24d   :  { %v1030_v9 = vpack.c.bf16 %v2539_v20, %v2536_v38 }
 0x24f   :  { %1849 = vst [vmem:[%s2610_s5 + $0x8] sm:$0xff] %v1030_v9   ;;  %1258 = vmatmul.mubr.bf16.vlgmr.msra.gmra.mrb[8].mxu0 %v1030_v9  ;;  %1981 = vmatmul.mubr.bf16.vlgmr.msra.gmra.mrb[16].mxu1 %v1030_v9 }
 0x250   :  { %1539 = vmatpush1.bf16.msra.mxu0 %v2355_v27  ;;  %1570 = vmatprep.mubr.bf16.mxu0 %v2226_v0  ;;  %v2143_v0 = vld [vmem:[#allocation4 + $0x8] ss:$12 sps:$4 sm:$0xff]   ;;  %v2144_v27 = vld [vmem:[#allocation4 + $0x20] ss:$12 sps:$4 sm:$0xff]  }
 0x251   :  { %1540 = vmatprep.subr.bf16.mxu0 %v2358_v28  ;;  %2000 = vmatprep.mubr.msk.bf16.mxu1 %vm2228_vm0, %v2227_v34  ;;  %v2145_v28 = vld [vmem:[#allocation4 + $0x38] ss:$12 sps:$4 sm:$0xff]  }
 0x252   :  { %1985 = vmatpush3.bf16.msra.mxu1 %v2143_v0 }
 0x253   :  { %1986 = vmatprep.subr.bf16.mxu1 %v2227_v34 }
 0x254   :  { %1541 = vmatpush1.bf16.msra.mxu0 %v2361_v29  ;;  %v2146_v29 = vld [vmem:[#allocation4 + $0x50] ss:$12 sps:$4 sm:$0xff]  }
 0x255   :  { %1542 = vmatprep.subr.bf16.mxu0 %v2368_v31  ;;  %v2147_v31 = vld [vmem:[#allocation4 + $0x68] ss:$12 sps:$4 sm:$0xff]  }
 0x256   :  { %1987 = vmatpush3.bf16.msra.mxu1 %v2144_v27 }
 0x257   :  { %1988 = vmatprep.subr.bf16.mxu1 %v2227_v34 }
 0x258   :  { %1543 = vmatpush1.bf16.msra.mxu0 %v2370_v33  ;;  %v2148_v33 = vld [vmem:[#allocation4 + $0x80] ss:$12 sps:$4 sm:$0xff]  }
 0x259   :  { %1544 = vmatprep.subr.bf16.mxu0 %v2378_v36  ;;  %v2149_v36 = vld [vmem:[#allocation4 + $0x98] ss:$12 sps:$4 sm:$0xff]  }
 0x25a   :  { %1989 = vmatpush3.bf16.msra.mxu1 %v2145_v28 }
 0x25b   :  { %1990 = vmatprep.subr.bf16.mxu1 %v2227_v34 }
 0x25c   :  { %1545 = vmatpush1.bf16.msra.mxu0 %v2380_v37  ;;  %v2150_v37 = vld [vmem:[#allocation4 + $0xb0] ss:$12 sps:$4 sm:$0xff]  }
 0x25d   :  { %1546 = vmatprep.subr.bf16.mxu0 %v2382_v39  ;;  %v1080_v39 = vld [vmem:[%s2609_s4] sm:$0x7] }
 0x25e   :  { %1991 = vmatpush3.bf16.msra.mxu1 %v2146_v29  ;;  %v1093_v10 = vrot.slane %v1080_v39, %v2453_v2 }
 0x25f   :  { %1992 = vmatprep.subr.bf16.mxu1 %v2227_v34 }
 0x260   :  { %1547 = vmatpush1.bf16.msra.mxu0 %v2391_v42  ;;  %v1085_v42 = vrot.slane %v1080_v39, %v2471_v19 }
 0x261   :  { %1548 = vmatprep.subr.bf16.mxu0 %v2393_v43  ;;  %v1089_v43 = vrot.slane %v1080_v39, %v2476_v21 }
 0x262   :  { %1993 = vmatpush3.bf16.msra.mxu1 %v2147_v31 }
 0x263   :  { %1994 = vmatprep.subr.bf16.mxu1 %v2227_v34 }
 0x264   :  { %1549 = vmatpush1.bf16.msra.mxu0 %v2398_v45  ;;  %v2020_v45 = vadd.f32 %v1085_v42, %v2479_v22 }
 0x265   :  { %1550 = vmatprep.subr.bf16.mxu0 %v2402_v46 }
 0x266   :  { %1995 = vmatpush3.bf16.msra.mxu1 %v2148_v33 }
 0x267   :  { %1996 = vmatprep.subr.bf16.mxu1 %v2227_v34 }
 0x268   :  { %1551 = vmatpush1.bf16.msra.mxu0 %v2408_v48 }
 0x269   :  { %1552 = vmatprep.subr.bf16.mxu0 %v2410_v49  ;;  %v2022_v49 = vadd.f32 %v1089_v43, %v2483_v24 }
 0x26a   :  { %1997 = vmatpush3.bf16.msra.mxu1 %v2149_v36 }
 0x26b   :  { %1998 = vmatprep.subr.bf16.mxu1 %v2227_v34 }
 0x26c   :  { %1553 = vmatpush1.bf16.msra.mxu0 %v2417_v51 }
 0x26e   :  { %1999 = vmatpush3.bf16.msra.mxu1 %v2150_v37 }
 0x322   :  { %v1259_v46 = vpop.f32.mrb[8].mxu0  ;;  %v1302_v48 = vpop.f32.mrb[16].mxu1 }
 0x323   :  { %v2021_v51 = vadd.f32 %v2020_v45, %v1259_v46  ;;  %v1261_v57 = vpop.f32.mrb[9].mxu0  ;;  %v1982_v4 = vpop.f32.mrb[17].mxu1  ;;  %v1303_v61 = vadd.f32 %v1302_v48, %v1093_v10 }
 0x324   :  { %v1263_v34 = vpop.f32.mrb[10].mxu0  ;;  %v1305_v41 = vpop.f32.mrb[18].mxu1  ;;  %v2023_v53 = vadd.f32 %v2022_v49, %v1261_v57 }
 0x325   :  { %v1311_v44 = vmul.f32 0.5, %v2021_v51  ;;  %v2025_v47 = vadd.f32 %v2020_v45, %v1263_v34  ;;  %v1265_v50 = vpop.f32.mrb[11].mxu0  ;;  %v1983_v52 = vpop.f32.mrb[19].mxu1  ;;  %v1306_v1 = vadd.f32 %v1305_v41, %v1093_v10 }
 0x326   :  { %v2027_v54 = vadd.f32 %v2022_v49, %v1265_v50  ;;  %v1321_v55 = vmul.f32 0.5, %v2023_v53 }
 0x327   :  { %2175 = vtanh.f32 %v1311_v44  ;;  %v1312_v7 = vmul.f32 0.5, %v2025_v47 }
 0x328   :  { %v1322_v56 = vmul.f32 0.5, %v2027_v54 }
 0x329   :  { %2177 = vtanh.f32 %v1312_v7 }
 0x32a   :  { %2179 = vtanh.f32 %v1321_v55 }
 0x32b   :  { %2181 = vtanh.f32 %v1322_v56 }
 0x331   :  { %v2176_v58 = vpop.eup %2175 }
 0x332   :  { %v1315_v59 = vadd.f32 1.0, %v2176_v58 }
 0x333   :  { %v2178_v60 = vpop.eup %2177 }
 0x334   :  { %v1317_v62 = vmul.f32 0.5, %v1315_v59  ;;  %v1316_v25 = vadd.f32 1.0, %v2178_v60  ;;  %v2180_v8 = vpop.eup %2179 }
 0x335   :  { %v2182_v13 = vpop.eup %2181  ;;  %v1325_v23 = vadd.f32 1.0, %v2180_v8 }
 0x336   :  { %v1329_v63 = vmul.f32 %v1317_v62, %v1303_v61  ;;  %v1318_v5 = vmul.f32 0.5, %v1316_v25  ;;  %v1326_v15 = vadd.f32 1.0, %v2182_v13 }
 0x337   :  { %v1327_v26 = vmul.f32 0.5, %v1325_v23 }
 0x338   :  { %v1331_v11 = vadd.f32 %v1329_v63, %v2465_v14  ;;  %v1330_v3 = vmul.f32 %v1318_v5, %v1306_v1  ;;  %v1328_v30 = vmul.f32 0.5, %v1326_v15 }
 0x339   :  { %v1335_v32 = vsub.f32 1.0, %v1327_v26  ;;  %v1339_v40 = vmul.f32 %v1327_v26, %v2536_v38 }
 0x33a   :  { %2183 = vtanh.f32 %v1331_v11  ;;  %v1332_v17 = vadd.f32 %v1330_v3, %v2469_v18  ;;  %v1336_v9 = vsub.f32 1.0, %v1328_v30  ;;  %v1340_v14 = vmul.f32 %v1328_v30, %v2539_v20  ;;  %v1393_v18 = vld [vmem:[%s2609_s4] sm:$0x7] }
 0x33b   :  { %v1398_v38 = vrot.slane %v1393_v18, %v2471_v19  ;;  %v1402_v33 = vrot.slane %v1393_v18, %v2476_v21  ;;  %v1406_v44 = vrot.slane %v1393_v18, %v2453_v2 }
 0x33c   :  { %2185 = vtanh.f32 %v1332_v17 }
 0x33d   :  { %v2028_v36 = vadd.f32 %v1398_v38, %v2479_v22  ;;  %v2030_v39 = vadd.f32 %v1402_v33, %v2483_v24 }
 0x344   :  { %v2184_v35 = vpop.eup %2183 }
 0x345   :  { %v1337_v6 = vmul.f32 %v2184_v35, %v1335_v32 }
 0x346   :  { %v2186_v0 = vpop.eup %2185 }
 0x347   :  { %v1341_v27 = vadd.f32 %v1339_v40, %v1337_v6  ;;  %v1338_v28 = vmul.f32 %v2186_v0, %v1336_v9 }
 0x349   :  { %v1342_v29 = vadd.f32 %v1340_v14, %v1338_v28 }
 0x34b   :  { %v1343_v31 = vpack.c.bf16 %v1342_v29, %v1341_v27 }
 0x34d   :  { %1850 = vst [vmem:[%s2610_s5 + $0x10] sm:$0xff] %v1343_v31   ;;  %1571 = vmatmul.mubr.bf16.vlgmr.msra.gmra.mrb[12].mxu0 %v1343_v31  ;;  %2001 = vmatmul.mubr.bf16.vlgmr.msra.gmra.mrb[20].mxu1 %v1343_v31 }
 0x420   :  { %v1572_v37 = vpop.f32.mrb[12].mxu0  ;;  %v1615_v20 = vpop.f32.mrb[20].mxu1 }
 0x421   :  { %v2029_v42 = vadd.f32 %v2028_v36, %v1572_v37  ;;  %v1574_v43 = vpop.f32.mrb[13].mxu0  ;;  %v2002_v45 = vpop.f32.mrb[21].mxu1  ;;  %v1616_v52 = vadd.f32 %v1615_v20, %v1406_v44 }
 0x422   :  { %v1576_v46 = vpop.f32.mrb[14].mxu0  ;;  %v1618_v48 = vpop.f32.mrb[22].mxu1  ;;  %v2031_v34 = vadd.f32 %v2030_v39, %v1574_v43 }
 0x423   :  { %v1624_v49 = vmul.f32 0.5, %v2029_v42  ;;  %v2033_v51 = vadd.f32 %v2028_v36, %v1576_v46  ;;  %v1578_v57 = vpop.f32.mrb[15].mxu0  ;;  %v2003_v4 = vpop.f32.mrb[23].mxu1  ;;  %v1619_v55 = vadd.f32 %v1618_v48, %v1406_v44 }
 0x424   :  { %v2035_v41 = vadd.f32 %v2030_v39, %v1578_v57  ;;  %v1634_v21 = vmul.f32 0.5, %v2031_v34 }
 0x425   :  { %2187 = vtanh.f32 %v1624_v49  ;;  %v1625_v19 = vmul.f32 0.5, %v2033_v51 }
 0x426   :  { %v1635_v22 = vmul.f32 0.5, %v2035_v41 }
 0x427   :  { %2189 = vtanh.f32 %v1625_v19 }
 0x428   :  { %2191 = vtanh.f32 %v1634_v21 }
 0x429   :  { %2193 = vtanh.f32 %v1635_v22 }
 0x42f   :  { %v2188_v24 = vpop.eup %2187 }
 0x430   :  { %v1628_v47 = vadd.f32 1.0, %v2188_v24 }
 0x431   :  { %v2190_v50 = vpop.eup %2189 }
 0x432   :  { %v1630_v53 = vmul.f32 0.5, %v1628_v47  ;;  %v1629_v7 = vadd.f32 1.0, %v2190_v50  ;;  %v2192_v10 = vpop.eup %2191 }
 0x433   :  { %v2194_v60 = vpop.eup %2193  ;;  %v1638_v62 = vadd.f32 1.0, %v2192_v10 }
 0x434   :  { %v1642_v54 = vmul.f32 %v1630_v53, %v1616_v52  ;;  %v1631_v56 = vmul.f32 0.5, %v1629_v7  ;;  %v1639_v2 = vadd.f32 1.0, %v2194_v60 }
 0x435   :  { %v1640_v25 = vmul.f32 0.5, %v1638_v62 }
 0x436   :  { %v1644_v58 = vadd.f32 %v1642_v54, %v2463_v12  ;;  %v1643_v59 = vmul.f32 %v1631_v56, %v1619_v55  ;;  %v1641_v63 = vmul.f32 0.5, %v1639_v2 }
 0x437   :  { %v1648_v1 = vsub.f32 1.0, %v1640_v25  ;;  %v1652_v11 = vmul.f32 %v1640_v25, %v1341_v27 }
 0x438   :  { %2195 = vtanh.f32 %v1644_v58  ;;  %v1645_v61 = vadd.f32 %v1643_v59, %v2467_v16  ;;  %v1649_v3 = vsub.f32 1.0, %v1641_v63  ;;  %v1653_v15 = vmul.f32 %v1641_v63, %v1342_v29 }
 0x43a   :  { %2197 = vtanh.f32 %v1645_v61 }
 0x442   :  { %v2196_v5 = vpop.eup %2195 }
 0x443   :  { %v1650_v8 = vmul.f32 %v2196_v5, %v1648_v1 }
 0x444   :  { %v2198_v13 = vpop.eup %2197 }
 0x445   :  { %v1654_v17 = vadd.f32 %v1652_v11, %v1650_v8  ;;  %v1651_v23 = vmul.f32 %v2198_v13, %v1649_v3 }
 0x447   :  { %1672 = vst [vmem:[%s2611_s6] sm:$0xff] %v1654_v17  ;;  %v1655_v12 = vadd.f32 %v1653_v15, %v1651_v23 }
 0x449   :  { %v1847_v16 = vpack.c.bf16 %v1655_v12, %v1654_v17  ;;  %1673 = vst [vmem:[%s2611_s6 + $0x8] sm:$0xff] %v1655_v12 }
 0x44b   :  { %1851 = vst [vmem:[%s2610_s5 + $0x18] sm:$0xff] %v1847_v16  }
 0x44c   :  { %1682 = vsyncpa [#allocation5], 1 }

</bundles_post_ra>
